<compile_context>
chip_gen: v5e
topology: v5e:2x2
jax: 0.10.0
libtpu: 0.0.40
codegen_flags: <defaults>
</compile_context>

<pallas_src>
import functools

import jax
import jax.numpy as jnp
from jax.experimental import pallas as pl
from jax.experimental.pallas import tpu as pltpu


def _round_up(x, m):
    return (x + m - 1) // m * m


# ----------------------------------------------------------------------------
# Kernel
# ----------------------------------------------------------------------------
def _gaussian_gru_kernel(n_layers, Hp, Op,
                         x_ref, eps_ref,
                         we_ref, be_ref,
                         wih_ref, whh_ref, bih_ref, bhh_ref, h0_ref,
                         whead_ref, bhead_ref,
                         z_ref, mu_ref, lv_ref, h_all_ref):
    """One grid step == one module forward() step.

    h_all_ref is a resident output (constant block index across the time axis)
    and doubles as the carried per-layer recurrent state.
    """
    bf16 = jnp.bfloat16
    t = pl.program_id(0)

    # Initialize the carried hidden state from h0 at the first step.
    @pl.when(t == 0)
    def _():
        h_all_ref[...] = h0_ref[...]

    # embed = Linear(input_size, hidden_size)
    x = x_ref[0]                                            # (B, Ip) f32
    h_in = jnp.dot(x.astype(bf16), we_ref[...],
                   preferred_element_type=jnp.float32) + be_ref[...]

    # Hoisted recurrent matmuls: gh[l] depends only on the carried hidden
    # state, never on the serial h_in chain -> batch all layers in one einsum.
    h_prev_all = h_all_ref[...]                             # (L, B, Hp) f32
    gh_all = jnp.einsum("lbh,lhk->lbk",
                        h_prev_all.astype(bf16), whh_ref[...],
                        preferred_element_type=jnp.float32) + bhh_ref[...]

    # Stacked GRUCells (PyTorch gate order r, z, n); gates are laid out at
    # 128-lane-aligned offsets (multiples of Hp) so slicing is free.
    for l in range(n_layers):
        h_prev = h_prev_all[l]
        gi = jnp.dot(h_in.astype(bf16), wih_ref[l],
                     preferred_element_type=jnp.float32) + bih_ref[l]
        gh = gh_all[l]
        r = jax.nn.sigmoid(gi[:, :Hp] + gh[:, :Hp])
        zg = jax.nn.sigmoid(gi[:, Hp:2 * Hp] + gh[:, Hp:2 * Hp])
        n = jnp.tanh(gi[:, 2 * Hp:] + r * gh[:, 2 * Hp:])
        h_new = (1.0 - zg) * n + zg * h_prev
        h_all_ref[l] = h_new
        h_in = h_new

    # Fused mu/logvar heads: single matmul into (B, 2*Op), lane-aligned split.
    head = jnp.dot(h_in.astype(bf16), whead_ref[...],
                   preferred_element_type=jnp.float32) + bhead_ref[...]
    mu = head[:, :Op]
    logvar = head[:, Op:]

    # reparameterize: z = eps * exp(0.5 * logvar) + mu
    z = eps_ref[0] * jnp.exp(0.5 * logvar) + mu

    z_ref[0] = z
    mu_ref[0] = mu
    lv_ref[0] = logvar


# ----------------------------------------------------------------------------
# Parameter prep (padding + bf16 cast, done once)
# ----------------------------------------------------------------------------
def init_params(key, input_size, output_size, hidden_size, n_layers):
    """Deterministic synthetic f32 parameters (PyTorch-shaped, transposed)."""
    ks = jax.random.split(key, 10)
    s = 0.1
    return {
        "w_embed": s * jax.random.normal(ks[0], (input_size, hidden_size), jnp.float32),
        "b_embed": s * jax.random.normal(ks[1], (1, hidden_size), jnp.float32),
        "w_ih": s * jax.random.normal(ks[2], (n_layers, hidden_size, 3 * hidden_size), jnp.float32),
        "w_hh": s * jax.random.normal(ks[3], (n_layers, hidden_size, 3 * hidden_size), jnp.float32),
        "b_ih": s * jax.random.normal(ks[4], (n_layers, 1, 3 * hidden_size), jnp.float32),
        "b_hh": s * jax.random.normal(ks[5], (n_layers, 1, 3 * hidden_size), jnp.float32),
        "w_mu": s * jax.random.normal(ks[6], (hidden_size, output_size), jnp.float32),
        "b_mu": s * jax.random.normal(ks[7], (1, output_size), jnp.float32),
        "w_logvar": s * jax.random.normal(ks[8], (hidden_size, output_size), jnp.float32),
        "b_logvar": s * jax.random.normal(ks[9], (1, output_size), jnp.float32),
    }


def prepare_params(p):
    """Pad feature dims to 128 lanes, gate-align r|z|n, fuse heads, cast bf16."""
    I, H = p["w_embed"].shape
    O = p["w_mu"].shape[1]
    L = p["w_ih"].shape[0]
    Ip, Hp, Op = _round_up(I, 128), _round_up(H, 128), _round_up(O, 128)
    bf16 = jnp.bfloat16

    def pad2(a, shape):
        return jnp.pad(a, ((0, shape[0] - a.shape[0]), (0, shape[1] - a.shape[1])))

    def pad_gates_w(w):  # (L, H, 3H) -> (L, Hp, 3*Hp), each gate at k*Hp
        w3 = w.reshape(L, H, 3, H)
        w3 = jnp.pad(w3, ((0, 0), (0, Hp - H), (0, 0), (0, Hp - H)))
        return w3.reshape(L, Hp, 3 * Hp)

    def pad_gates_b(b):  # (L, 1, 3H) -> (L, 1, 3*Hp)
        b3 = b.reshape(L, 1, 3, H)
        b3 = jnp.pad(b3, ((0, 0), (0, 0), (0, 0), (0, Hp - H)))
        return b3.reshape(L, 1, 3 * Hp)

    w_head = jnp.concatenate([pad2(p["w_mu"], (Hp, Op)),
                              pad2(p["w_logvar"], (Hp, Op))], axis=1)
    b_head = jnp.concatenate([pad2(p["b_mu"], (1, Op)),
                              pad2(p["b_logvar"], (1, Op))], axis=1)

    return {
        "w_embed": pad2(p["w_embed"], (Ip, Hp)).astype(bf16),
        "b_embed": pad2(p["b_embed"], (1, Hp)),
        "w_ih": pad_gates_w(p["w_ih"]).astype(bf16),
        "w_hh": pad_gates_w(p["w_hh"]).astype(bf16),
        "b_ih": pad_gates_b(p["b_ih"]),
        "b_hh": pad_gates_b(p["b_hh"]),
        "w_head": w_head.astype(bf16),
        "b_head": b_head,
        "dims": (I, O, H, L, Ip, Op, Hp),
    }


# ----------------------------------------------------------------------------
# Wrappers
# ----------------------------------------------------------------------------
def gaussian_gru_sequence(x_seq, eps_seq, h0, prep):
    """Run T module-forward steps in one pallas_call (weights stay in VMEM).

    x_seq: (T, B, input_size), eps_seq: (T, B, output_size),
    h0: (L, B, hidden_size).
    Returns (z, mu, logvar) each (T, B, output_size) and the final per-layer
    hidden stack (L, B, hidden_size).
    """
    I, O, H, L, Ip, Op, Hp = prep["dims"]
    T, B, _ = x_seq.shape
    Bp = _round_up(B, 8)

    xp = jnp.pad(x_seq, ((0, 0), (0, Bp - B), (0, Ip - I)))
    ep = jnp.pad(eps_seq, ((0, 0), (0, Bp - B), (0, Op - O)))
    h0p = jnp.pad(h0, ((0, 0), (0, Bp - B), (0, Hp - H)))

    kernel = functools.partial(_gaussian_gru_kernel, L, Hp, Op)

    def const(shape):   # weight / state block, resident across the time axis
        return pl.BlockSpec(shape, lambda t, _n=len(shape): (0,) * _n)

    def per_step(shape):  # per-time-step block
        return pl.BlockSpec(shape, lambda t: (t, 0, 0))

    out_shape = (
        jax.ShapeDtypeStruct((T, Bp, Op), jnp.float32),   # z
        jax.ShapeDtypeStruct((T, Bp, Op), jnp.float32),   # mu
        jax.ShapeDtypeStruct((T, Bp, Op), jnp.float32),   # logvar
        jax.ShapeDtypeStruct((L, Bp, Hp), jnp.float32),   # final hidden stack
    )

    zs, mus, lvs, h_all = pl.pallas_call(
        kernel,
        grid=(T,),
        in_specs=[
            per_step((1, Bp, Ip)),          # x
            per_step((1, Bp, Op)),          # eps
            const((Ip, Hp)),                # w_embed (bf16)
            const((1, Hp)),                 # b_embed
            const((L, Hp, 3 * Hp)),         # w_ih (bf16)
            const((L, Hp, 3 * Hp)),         # w_hh (bf16)
            const((L, 1, 3 * Hp)),          # b_ih
            const((L, 1, 3 * Hp)),          # b_hh
            const((L, Bp, Hp)),             # h0
            const((Hp, 2 * Op)),            # w_head (bf16)
            const((1, 2 * Op)),             # b_head
        ],
        out_specs=(
            per_step((1, Bp, Op)),
            per_step((1, Bp, Op)),
            per_step((1, Bp, Op)),
            const((L, Bp, Hp)),             # carried hidden state
        ),
        out_shape=out_shape,
        compiler_params=pltpu.CompilerParams(
            dimension_semantics=("arbitrary",),   # hidden state carries over t
            vmem_limit_bytes=32 * 1024 * 1024,
        ),
    )(xp, ep,
      prep["w_embed"], prep["b_embed"],
      prep["w_ih"], prep["w_hh"], prep["b_ih"], prep["b_hh"],
      h0p, prep["w_head"], prep["b_head"])

    return (zs[:, :B, :O], mus[:, :B, :O], lvs[:, :B, :O], h_all[:, :B, :H])


def gaussian_gru_forward(x, eps, hidden, prep):
    """Single module forward() step. Returns (z, mu, logvar, h_in, new_hidden)."""
    zs, mus, lvs, h_all = gaussian_gru_sequence(x[None], eps[None], hidden, prep)
    return zs[0], mus[0], lvs[0], h_all[-1], h_all


# ----------------------------------------------------------------------------
# Pure-JAX reference (emulates the kernel's bf16-weight / f32-accum numerics)
# ----------------------------------------------------------------------------
def ref_step(x, p, eps, hidden):
    bf16 = jnp.bfloat16

    def mm(a, w):
        return jnp.dot(a.astype(bf16), w.astype(bf16),
                       preferred_element_type=jnp.float32)

    H = p["w_embed"].shape[1]
    h_in = mm(x, p["w_embed"]) + p["b_embed"]
    new_h = []
    for l in range(p["w_ih"].shape[0]):
        h_prev = hidden[l]
        gi = mm(h_in, p["w_ih"][l]) + p["b_ih"][l]
        gh = mm(h_prev, p["w_hh"][l]) + p["b_hh"][l]
        r = jax.nn.sigmoid(gi[:, :H] + gh[:, :H])
        zg = jax.nn.sigmoid(gi[:, H:2 * H] + gh[:, H:2 * H])
        n = jnp.tanh(gi[:, 2 * H:] + r * gh[:, 2 * H:])
        h_new = (1.0 - zg) * n + zg * h_prev
        new_h.append(h_new)
        h_in = h_new
    mu = mm(h_in, p["w_mu"]) + p["b_mu"]
    logvar = mm(h_in, p["w_logvar"]) + p["b_logvar"]
    z = eps * jnp.exp(0.5 * logvar) + mu
    return z, mu, logvar, h_in, jnp.stack(new_h)


# ----------------------------------------------------------------------------
# Test harness
# ----------------------------------------------------------------------------
if __name__ == "__main__":
    batch_size, input_size, output_size, hidden_size, n_layers = 8, 16, 16, 32, 2

    key = jax.random.PRNGKey(0)
    k_param, k_x, k_eps, k_h, k_xs, k_es = jax.random.split(key, 6)

    params = init_params(k_param, input_size, output_size, hidden_size, n_layers)
    prep = prepare_params(params)

    def ok(a, b):
        return jnp.allclose(a, b, atol=5e-4, rtol=5e-4)

    # --- single forward step with zero hidden (module's init_hidden()) ------
    x = jax.random.normal(k_x, (batch_size, input_size), jnp.float32)
    # reparameterization noise drawn deterministically here, consumed in-kernel
    eps = jax.random.normal(k_eps, (batch_size, output_size), jnp.float32)
    h0 = jnp.zeros((n_layers, batch_size, hidden_size), jnp.float32)

    z, mu, logvar, h_in, h_new = gaussian_gru_forward(x, eps, h0, prep)
    jax.block_until_ready((z, mu, logvar, h_in, h_new))

    z_r, mu_r, lv_r, hin_r, hall_r = ref_step(x, params, eps, h0)
    assert ok(z, z_r), "z mismatch (single step)"
    assert ok(mu, mu_r), "mu mismatch (single step)"
    assert ok(logvar, lv_r), "logvar mismatch (single step)"
    assert ok(h_in, hin_r), "h_in mismatch (single step)"
    assert ok(h_new, hall_r), "hidden stack mismatch (single step)"

    # --- multi-step sequence with NONZERO hidden (exercises the w_hh path) --
    T = 4
    xs = jax.random.normal(k_xs, (T, batch_size, input_size), jnp.float32)
    es = jax.random.normal(k_es, (T, batch_size, output_size), jnp.float32)
    h_init = 0.5 * jax.random.normal(k_h, (n_layers, batch_size, hidden_size),
                                     jnp.float32)

    zs, mus, lvs, h_fin = gaussian_gru_sequence(xs, es, h_init, prep)
    jax.block_until_ready((zs, mus, lvs, h_fin))

    h_ref = h_init
    for t in range(T):
        z_t, mu_t, lv_t, hin_t, h_ref = ref_step(xs[t], params, es[t], h_ref)
        assert ok(zs[t], z_t), f"z mismatch at step {t}"
        assert ok(mus[t], mu_t), f"mu mismatch at step {t}"
        assert ok(lvs[t], lv_t), f"logvar mismatch at step {t}"
    assert ok(h_fin, h_ref), "final hidden stack mismatch (sequence)"

    print("KERNEL_OK")
</pallas_src>

<mosaic_0001>
module attributes {stable_mosaic.version = 11 : i64} {
  func.func @_gaussian_gru_kernel(%arg0: i32, %arg1: memref<1x8x128xf32, #tpu.memory_space<vmem>>, %arg2: memref<1x8x128xf32, #tpu.memory_space<vmem>>, %arg3: memref<128x128xbf16, #tpu.memory_space<vmem>>, %arg4: memref<1x128xf32, #tpu.memory_space<vmem>>, %arg5: memref<2x128x384xbf16, #tpu.memory_space<vmem>>, %arg6: memref<2x128x384xbf16, #tpu.memory_space<vmem>>, %arg7: memref<2x1x384xf32, #tpu.memory_space<vmem>>, %arg8: memref<2x1x384xf32, #tpu.memory_space<vmem>>, %arg9: memref<2x8x128xf32, #tpu.memory_space<vmem>>, %arg10: memref<128x256xbf16, #tpu.memory_space<vmem>>, %arg11: memref<1x256xf32, #tpu.memory_space<vmem>>, %arg12: memref<1x8x128xf32, #tpu.memory_space<vmem>>, %arg13: memref<1x8x128xf32, #tpu.memory_space<vmem>>, %arg14: memref<1x8x128xf32, #tpu.memory_space<vmem>>, %arg15: memref<2x8x128xf32, #tpu.memory_space<vmem>>) attributes {dimension_semantics = [#tpu.dimension_semantics<arbitrary>], iteration_bounds = array<i64: 1>, scalar_prefetch = 0 : i64, scratch_operands = 0 : i64, tpu.core_type = #tpu.core_type<tc>, window_params = [{transform_indices = @transform_0, window_bounds = array<i64: 1, 8, 128>}, {transform_indices = @transform_1, window_bounds = array<i64: 1, 8, 128>}, {pipeline_mode = #tpu.pipeline_mode<synchronous>, transform_indices = @transform_2, window_bounds = array<i64: 128, 128>}, {pipeline_mode = #tpu.pipeline_mode<synchronous>, transform_indices = @transform_3, window_bounds = array<i64: 1, 128>}, {pipeline_mode = #tpu.pipeline_mode<synchronous>, transform_indices = @transform_4, window_bounds = array<i64: 2, 128, 384>}, {pipeline_mode = #tpu.pipeline_mode<synchronous>, transform_indices = @transform_5, window_bounds = array<i64: 2, 128, 384>}, {pipeline_mode = #tpu.pipeline_mode<synchronous>, transform_indices = @transform_6, window_bounds = array<i64: 2, 1, 384>}, {pipeline_mode = #tpu.pipeline_mode<synchronous>, transform_indices = @transform_7, window_bounds = array<i64: 2, 1, 384>}, {pipeline_mode = #tpu.pipeline_mode<synchronous>, transform_indices = @transform_8, window_bounds = array<i64: 2, 8, 128>}, {pipeline_mode = #tpu.pipeline_mode<synchronous>, transform_indices = @transform_9, window_bounds = array<i64: 128, 256>}, {pipeline_mode = #tpu.pipeline_mode<synchronous>, transform_indices = @transform_10, window_bounds = array<i64: 1, 256>}, {transform_indices = @transform_11, window_bounds = array<i64: 1, 8, 128>}, {transform_indices = @transform_12, window_bounds = array<i64: 1, 8, 128>}, {transform_indices = @transform_13, window_bounds = array<i64: 1, 8, 128>}, {pipeline_mode = #tpu.pipeline_mode<synchronous>, transform_indices = @transform_14, window_bounds = array<i64: 2, 8, 128>}]} {
    %c0_i32 = arith.constant 0 : i32
    %0 = arith.cmpi eq, %arg0, %c0_i32 : i32
    %1 = arith.extui %0 : i1 to i32
    %c0_i32_0 = arith.constant 0 : i32
    %2 = arith.cmpi ne, %1, %c0_i32_0 : i32
    scf.if %2 {
      %c0_60 = arith.constant 0 : index
      %c0_61 = arith.constant 0 : index
      %c0_62 = arith.constant 0 : index
      %124 = vector.load %arg9[%c0_60, %c0_61, %c0_62] : memref<2x8x128xf32, #tpu.memory_space<vmem>>, vector<2x8x128xf32>
      %c0_63 = arith.constant 0 : index
      %c0_64 = arith.constant 0 : index
      %c0_65 = arith.constant 0 : index
      %125 = vector.load %arg15[%c0_63, %c0_64, %c0_65] : memref<2x8x128xf32, #tpu.memory_space<vmem>>, vector<2x8x128xf32>
      tpu.vector_store %arg15[%c0_63, %c0_64, %c0_65], %124 {strides = array<i32>} : memref<2x8x128xf32, #tpu.memory_space<vmem>>, vector<2x8x128xf32>,
    } else {
    }
    %c0 = arith.constant 0 : index
    %c0_1 = arith.constant 0 : index
    %c0_2 = arith.constant 0 : index
    %3 = vector.load %arg1[%c0, %c0_1, %c0_2] : memref<1x8x128xf32, #tpu.memory_space<vmem>>, vector<1x8x128xf32>
    %4 = vector.shape_cast %3 : vector<1x8x128xf32> to vector<8x128xf32>
    %5 = arith.truncf %4 : vector<8x128xf32> to vector<8x128xbf16>
    %c0_3 = arith.constant 0 : index
    %c0_4 = arith.constant 0 : index
    %6 = vector.load %arg3[%c0_3, %c0_4] : memref<128x128xbf16, #tpu.memory_space<vmem>>, vector<128x128xbf16>
    %cst = arith.constant dense<0.000000e+00> : vector<8x128xf32>
    %7 = tpu.matmul %5, %6, %cst {dimension_numbers = #tpu.dot_dimension_numbers<[1], [0], [0], [1], [0, 0, 1, 1], [], []>} : vector<8x128xbf16>, vector<128x128xbf16>, vector<8x128xf32> -> vector<8x128xf32>
    %c0_5 = arith.constant 0 : index
    %c0_6 = arith.constant 0 : index
    %8 = vector.load %arg4[%c0_5, %c0_6] : memref<1x128xf32, #tpu.memory_space<vmem>>, vector<1x128xf32>
    %9 = vector.broadcast %8 : vector<1x128xf32> to vector<8x128xf32>
    %10 = arith.addf %7, %9 : vector<8x128xf32>
    %c0_7 = arith.constant 0 : index
    %c0_8 = arith.constant 0 : index
    %c0_9 = arith.constant 0 : index
    %11 = vector.load %arg15[%c0_7, %c0_8, %c0_9] : memref<2x8x128xf32, #tpu.memory_space<vmem>>, vector<2x8x128xf32>
    %12 = arith.truncf %11 : vector<2x8x128xf32> to vector<2x8x128xbf16>
    %c0_10 = arith.constant 0 : index
    %c0_11 = arith.constant 0 : index
    %c0_12 = arith.constant 0 : index
    %13 = vector.load %arg6[%c0_10, %c0_11, %c0_12] : memref<2x128x384xbf16, #tpu.memory_space<vmem>>, vector<2x128x384xbf16>
    "tpu.trace_start"() <{level = 10 : i32, message = "lbh,lhk->lbk"}> : () -> ()
    %cst_13 = arith.constant dense<0.000000e+00> : vector<2x8x384xf32>
    %14 = tpu.matmul %12, %13, %cst_13 {dimension_numbers = #tpu.dot_dimension_numbers<[2], [1], [1], [2], [0, 0, 0, 1, 1, 2], [0], [0]>} : vector<2x8x128xbf16>, vector<2x128x384xbf16>, vector<2x8x384xf32> -> vector<2x8x384xf32>
    "tpu.trace_stop"() : () -> ()
    %c0_14 = arith.constant 0 : index
    %c0_15 = arith.constant 0 : index
    %c0_16 = arith.constant 0 : index
    %15 = vector.load %arg8[%c0_14, %c0_15, %c0_16] : memref<2x1x384xf32, #tpu.memory_space<vmem>>, vector<2x1x384xf32>
    %16 = vector.broadcast %15 : vector<2x1x384xf32> to vector<2x8x384xf32>
    %17 = arith.addf %14, %16 : vector<2x8x384xf32>
    %18 = vector.extract_strided_slice %11 {offsets = [0, 0, 0], sizes = [1, 8, 128], strides = [1, 1, 1]} : vector<2x8x128xf32> to vector<1x8x128xf32>
    %19 = vector.shape_cast %18 : vector<1x8x128xf32> to vector<8x128xf32>
    %20 = arith.truncf %10 : vector<8x128xf32> to vector<8x128xbf16>
    %c0_17 = arith.constant 0 : index
    %c0_18 = arith.constant 0 : index
    %c0_19 = arith.constant 0 : index
    %21 = vector.load %arg5[%c0_17, %c0_18, %c0_19] : memref<2x128x384xbf16, #tpu.memory_space<vmem>>, vector<1x128x384xbf16>
    %22 = vector.shape_cast %21 : vector<1x128x384xbf16> to vector<128x384xbf16>
    %cst_20 = arith.constant dense<0.000000e+00> : vector<8x384xf32>
    %23 = tpu.matmul %20, %22, %cst_20 {dimension_numbers = #tpu.dot_dimension_numbers<[1], [0], [0], [1], [0, 0, 1, 1], [], []>} : vector<8x128xbf16>, vector<128x384xbf16>, vector<8x384xf32> -> vector<8x384xf32>
    %c0_21 = arith.constant 0 : index
    %c0_22 = arith.constant 0 : index
    %c0_23 = arith.constant 0 : index
    %24 = vector.load %arg7[%c0_21, %c0_22, %c0_23] : memref<2x1x384xf32, #tpu.memory_space<vmem>>, vector<1x1x384xf32>
    %25 = vector.shape_cast %24 : vector<1x1x384xf32> to vector<1x384xf32>
    %26 = vector.broadcast %25 : vector<1x384xf32> to vector<8x384xf32>
    %27 = arith.addf %23, %26 : vector<8x384xf32>
    %28 = vector.extract_strided_slice %17 {offsets = [0, 0, 0], sizes = [1, 8, 384], strides = [1, 1, 1]} : vector<2x8x384xf32> to vector<1x8x384xf32>
    %29 = vector.shape_cast %28 : vector<1x8x384xf32> to vector<8x384xf32>
    %30 = vector.extract_strided_slice %27 {offsets = [0, 0], sizes = [8, 128], strides = [1, 1]} : vector<8x384xf32> to vector<8x128xf32>
    %31 = vector.extract_strided_slice %29 {offsets = [0, 0], sizes = [8, 128], strides = [1, 1]} : vector<8x384xf32> to vector<8x128xf32>
    %32 = arith.addf %30, %31 : vector<8x128xf32>
    %33 = arith.negf %32 : vector<8x128xf32>
    %34 = math.exp %33 : vector<8x128xf32>
    %cst_24 = arith.constant 1.000000e+00 : f32
    %35 = vector.broadcast %cst_24 : f32 to vector<8x128xf32>
    %36 = arith.addf %35, %34 : vector<8x128xf32>
    %37 = arith.divf %35, %36 : vector<8x128xf32>
    %38 = vector.extract_strided_slice %27 {offsets = [0, 128], sizes = [8, 128], strides = [1, 1]} : vector<8x384xf32> to vector<8x128xf32>
    %39 = vector.extract_strided_slice %29 {offsets = [0, 128], sizes = [8, 128], strides = [1, 1]} : vector<8x384xf32> to vector<8x128xf32>
    %40 = arith.addf %38, %39 : vector<8x128xf32>
    %41 = arith.negf %40 : vector<8x128xf32>
    %42 = math.exp %41 : vector<8x128xf32>
    %cst_25 = arith.constant 1.000000e+00 : f32
    %43 = vector.broadcast %cst_25 : f32 to vector<8x128xf32>
    %44 = arith.addf %43, %42 : vector<8x128xf32>
    %45 = arith.divf %43, %44 : vector<8x128xf32>
    %46 = vector.extract_strided_slice %27 {offsets = [0, 256], sizes = [8, 128], strides = [1, 1]} : vector<8x384xf32> to vector<8x128xf32>
    %47 = vector.extract_strided_slice %29 {offsets = [0, 256], sizes = [8, 128], strides = [1, 1]} : vector<8x384xf32> to vector<8x128xf32>
    %48 = arith.mulf %37, %47 : vector<8x128xf32>
    %49 = arith.addf %46, %48 : vector<8x128xf32>
    %50 = math.tanh %49 : vector<8x128xf32>
    %cst_26 = arith.constant 1.000000e+00 : f32
    %51 = vector.broadcast %cst_26 : f32 to vector<8x128xf32>
    %52 = arith.subf %51, %45 : vector<8x128xf32>
    %53 = arith.mulf %52, %50 : vector<8x128xf32>
    %54 = arith.mulf %45, %19 : vector<8x128xf32>
    %55 = arith.addf %53, %54 : vector<8x128xf32>
    %c0_27 = arith.constant 0 : index
    %c0_28 = arith.constant 0 : index
    %c0_29 = arith.constant 0 : index
    %56 = vector.load %arg15[%c0_27, %c0_28, %c0_29] : memref<2x8x128xf32, #tpu.memory_space<vmem>>, vector<1x8x128xf32>
    %57 = vector.shape_cast %56 : vector<1x8x128xf32> to vector<8x128xf32>
    %58 = vector.shape_cast %55 : vector<8x128xf32> to vector<1x8x128xf32>
    tpu.vector_store %arg15[%c0_27, %c0_28, %c0_29], %58 {strides = array<i32>} : memref<2x8x128xf32, #tpu.memory_space<vmem>>, vector<1x8x128xf32>,
    %59 = vector.extract_strided_slice %11 {offsets = [1, 0, 0], sizes = [1, 8, 128], strides = [1, 1, 1]} : vector<2x8x128xf32> to vector<1x8x128xf32>
    %60 = vector.shape_cast %59 : vector<1x8x128xf32> to vector<8x128xf32>
    %61 = arith.truncf %55 : vector<8x128xf32> to vector<8x128xbf16>
    %c1 = arith.constant 1 : index
    %c0_30 = arith.constant 0 : index
    %c0_31 = arith.constant 0 : index
    %62 = vector.load %arg5[%c1, %c0_30, %c0_31] : memref<2x128x384xbf16, #tpu.memory_space<vmem>>, vector<1x128x384xbf16>
    %63 = vector.shape_cast %62 : vector<1x128x384xbf16> to vector<128x384xbf16>
    %cst_32 = arith.constant dense<0.000000e+00> : vector<8x384xf32>
    %64 = tpu.matmul %61, %63, %cst_32 {dimension_numbers = #tpu.dot_dimension_numbers<[1], [0], [0], [1], [0, 0, 1, 1], [], []>} : vector<8x128xbf16>, vector<128x384xbf16>, vector<8x384xf32> -> vector<8x384xf32>
    %c1_33 = arith.constant 1 : index
    %c0_34 = arith.constant 0 : index
    %c0_35 = arith.constant 0 : index
    %65 = vector.load %arg7[%c1_33, %c0_34, %c0_35] : memref<2x1x384xf32, #tpu.memory_space<vmem>>, vector<1x1x384xf32>
    %66 = vector.shape_cast %65 : vector<1x1x384xf32> to vector<1x384xf32>
    %67 = vector.broadcast %66 : vector<1x384xf32> to vector<8x384xf32>
    %68 = arith.addf %64, %67 : vector<8x384xf32>
    %69 = vector.extract_strided_slice %17 {offsets = [1, 0, 0], sizes = [1, 8, 384], strides = [1, 1, 1]} : vector<2x8x384xf32> to vector<1x8x384xf32>
    %70 = vector.shape_cast %69 : vector<1x8x384xf32> to vector<8x384xf32>
    %71 = vector.extract_strided_slice %68 {offsets = [0, 0], sizes = [8, 128], strides = [1, 1]} : vector<8x384xf32> to vector<8x128xf32>
    %72 = vector.extract_strided_slice %70 {offsets = [0, 0], sizes = [8, 128], strides = [1, 1]} : vector<8x384xf32> to vector<8x128xf32>
    %73 = arith.addf %71, %72 : vector<8x128xf32>
    %74 = arith.negf %73 : vector<8x128xf32>
    %75 = math.exp %74 : vector<8x128xf32>
    %cst_36 = arith.constant 1.000000e+00 : f32
    %76 = vector.broadcast %cst_36 : f32 to vector<8x128xf32>
    %77 = arith.addf %76, %75 : vector<8x128xf32>
    %78 = arith.divf %76, %77 : vector<8x128xf32>
    %79 = vector.extract_strided_slice %68 {offsets = [0, 128], sizes = [8, 128], strides = [1, 1]} : vector<8x384xf32> to vector<8x128xf32>
    %80 = vector.extract_strided_slice %70 {offsets = [0, 128], sizes = [8, 128], strides = [1, 1]} : vector<8x384xf32> to vector<8x128xf32>
    %81 = arith.addf %79, %80 : vector<8x128xf32>
    %82 = arith.negf %81 : vector<8x128xf32>
    %83 = math.exp %82 : vector<8x128xf32>
    %cst_37 = arith.constant 1.000000e+00 : f32
    %84 = vector.broadcast %cst_37 : f32 to vector<8x128xf32>
    %85 = arith.addf %84, %83 : vector<8x128xf32>
    %86 = arith.divf %84, %85 : vector<8x128xf32>
    %87 = vector.extract_strided_slice %68 {offsets = [0, 256], sizes = [8, 128], strides = [1, 1]} : vector<8x384xf32> to vector<8x128xf32>
    %88 = vector.extract_strided_slice %70 {offsets = [0, 256], sizes = [8, 128], strides = [1, 1]} : vector<8x384xf32> to vector<8x128xf32>
    %89 = arith.mulf %78, %88 : vector<8x128xf32>
    %90 = arith.addf %87, %89 : vector<8x128xf32>
    %91 = math.tanh %90 : vector<8x128xf32>
    %cst_38 = arith.constant 1.000000e+00 : f32
    %92 = vector.broadcast %cst_38 : f32 to vector<8x128xf32>
    %93 = arith.subf %92, %86 : vector<8x128xf32>
    %94 = arith.mulf %93, %91 : vector<8x128xf32>
    %95 = arith.mulf %86, %60 : vector<8x128xf32>
    %96 = arith.addf %94, %95 : vector<8x128xf32>
    %c1_39 = arith.constant 1 : index
    %c0_40 = arith.constant 0 : index
    %c0_41 = arith.constant 0 : index
    %97 = vector.load %arg15[%c1_39, %c0_40, %c0_41] : memref<2x8x128xf32, #tpu.memory_space<vmem>>, vector<1x8x128xf32>
    %98 = vector.shape_cast %97 : vector<1x8x128xf32> to vector<8x128xf32>
    %99 = vector.shape_cast %96 : vector<8x128xf32> to vector<1x8x128xf32>
    tpu.vector_store %arg15[%c1_39, %c0_40, %c0_41], %99 {strides = array<i32>} : memref<2x8x128xf32, #tpu.memory_space<vmem>>, vector<1x8x128xf32>,
    %100 = arith.truncf %96 : vector<8x128xf32> to vector<8x128xbf16>
    %c0_42 = arith.constant 0 : index
    %c0_43 = arith.constant 0 : index
    %101 = vector.load %arg10[%c0_42, %c0_43] : memref<128x256xbf16, #tpu.memory_space<vmem>>, vector<128x256xbf16>
    %cst_44 = arith.constant dense<0.000000e+00> : vector<8x256xf32>
    %102 = tpu.matmul %100, %101, %cst_44 {dimension_numbers = #tpu.dot_dimension_numbers<[1], [0], [0], [1], [0, 0, 1, 1], [], []>} : vector<8x128xbf16>, vector<128x256xbf16>, vector<8x256xf32> -> vector<8x256xf32>
    %c0_45 = arith.constant 0 : index
    %c0_46 = arith.constant 0 : index
    %103 = vector.load %arg11[%c0_45, %c0_46] : memref<1x256xf32, #tpu.memory_space<vmem>>, vector<1x256xf32>
    %104 = vector.broadcast %103 : vector<1x256xf32> to vector<8x256xf32>
    %105 = arith.addf %102, %104 : vector<8x256xf32>
    %106 = vector.extract_strided_slice %105 {offsets = [0, 0], sizes = [8, 128], strides = [1, 1]} : vector<8x256xf32> to vector<8x128xf32>
    %107 = vector.extract_strided_slice %105 {offsets = [0, 128], sizes = [8, 128], strides = [1, 1]} : vector<8x256xf32> to vector<8x128xf32>
    %c0_47 = arith.constant 0 : index
    %c0_48 = arith.constant 0 : index
    %c0_49 = arith.constant 0 : index
    %108 = vector.load %arg2[%c0_47, %c0_48, %c0_49] : memref<1x8x128xf32, #tpu.memory_space<vmem>>, vector<1x8x128xf32>
    %109 = vector.shape_cast %108 : vector<1x8x128xf32> to vector<8x128xf32>
    %cst_50 = arith.constant 5.000000e-01 : f32
    %110 = vector.broadcast %cst_50 : f32 to vector<8x128xf32>
    %111 = arith.mulf %110, %107 : vector<8x128xf32>
    %112 = math.exp %111 : vector<8x128xf32>
    %113 = arith.mulf %109, %112 : vector<8x128xf32>
    %114 = arith.addf %113, %106 : vector<8x128xf32>
    %c0_51 = arith.constant 0 : index
    %c0_52 = arith.constant 0 : index
    %c0_53 = arith.constant 0 : index
    %115 = vector.load %arg12[%c0_51, %c0_52, %c0_53] : memref<1x8x128xf32, #tpu.memory_space<vmem>>, vector<1x8x128xf32>
    %116 = vector.shape_cast %115 : vector<1x8x128xf32> to vector<8x128xf32>
    %117 = vector.shape_cast %114 : vector<8x128xf32> to vector<1x8x128xf32>
    tpu.vector_store %arg12[%c0_51, %c0_52, %c0_53], %117 {strides = array<i32>} : memref<1x8x128xf32, #tpu.memory_space<vmem>>, vector<1x8x128xf32>,
    %c0_54 = arith.constant 0 : index
    %c0_55 = arith.constant 0 : index
    %c0_56 = arith.constant 0 : index
    %118 = vector.load %arg13[%c0_54, %c0_55, %c0_56] : memref<1x8x128xf32, #tpu.memory_space<vmem>>, vector<1x8x128xf32>
    %119 = vector.shape_cast %118 : vector<1x8x128xf32> to vector<8x128xf32>
    %120 = vector.shape_cast %106 : vector<8x128xf32> to vector<1x8x128xf32>
    tpu.vector_store %arg13[%c0_54, %c0_55, %c0_56], %120 {strides = array<i32>} : memref<1x8x128xf32, #tpu.memory_space<vmem>>, vector<1x8x128xf32>,
    %c0_57 = arith.constant 0 : index
    %c0_58 = arith.constant 0 : index
    %c0_59 = arith.constant 0 : index
    %121 = vector.load %arg14[%c0_57, %c0_58, %c0_59] : memref<1x8x128xf32, #tpu.memory_space<vmem>>, vector<1x8x128xf32>
    %122 = vector.shape_cast %121 : vector<1x8x128xf32> to vector<8x128xf32>
    %123 = vector.shape_cast %107 : vector<8x128xf32> to vector<1x8x128xf32>
    tpu.vector_store %arg14[%c0_57, %c0_58, %c0_59], %123 {strides = array<i32>} : memref<1x8x128xf32, #tpu.memory_space<vmem>>, vector<1x8x128xf32>,
    return
  }
  func.func @transform_0(%arg0: i32) -> (i32, i32, i32) {
    %c0_i32 = arith.constant 0 : i32
    %c0_i32_0 = arith.constant 0 : i32
    %c0_i32_1 = arith.constant 0 : i32
    return %arg0, %c0_i32, %c0_i32_0 : i32, i32, i32
  }
  func.func @transform_1(%arg0: i32) -> (i32, i32, i32) {
    %c0_i32 = arith.constant 0 : i32
    %c0_i32_0 = arith.constant 0 : i32
    %c0_i32_1 = arith.constant 0 : i32
    return %arg0, %c0_i32, %c0_i32_0 : i32, i32, i32
  }
  func.func @transform_2(%arg0: i32) -> (i32, i32) {
    %c0_i32 = arith.constant 0 : i32
    %c0_i32_0 = arith.constant 0 : i32
    %c0_i32_1 = arith.constant 0 : i32
    return %c0_i32, %c0_i32_0 : i32, i32
  }
  func.func @transform_3(%arg0: i32) -> (i32, i32) {
    %c0_i32 = arith.constant 0 : i32
    %c0_i32_0 = arith.constant 0 : i32
    %c0_i32_1 = arith.constant 0 : i32
    return %c0_i32, %c0_i32_0 : i32, i32
  }
  func.func @transform_4(%arg0: i32) -> (i32, i32, i32) {
    %c0_i32 = arith.constant 0 : i32
    %c0_i32_0 = arith.constant 0 : i32
    %c0_i32_1 = arith.constant 0 : i32
    %c0_i32_2 = arith.constant 0 : i32
    return %c0_i32, %c0_i32_0, %c0_i32_1 : i32, i32, i32
  }
  func.func @transform_5(%arg0: i32) -> (i32, i32, i32) {
    %c0_i32 = arith.constant 0 : i32
    %c0_i32_0 = arith.constant 0 : i32
    %c0_i32_1 = arith.constant 0 : i32
    %c0_i32_2 = arith.constant 0 : i32
    return %c0_i32, %c0_i32_0, %c0_i32_1 : i32, i32, i32
  }
  func.func @transform_6(%arg0: i32) -> (i32, i32, i32) {
    %c0_i32 = arith.constant 0 : i32
    %c0_i32_0 = arith.constant 0 : i32
    %c0_i32_1 = arith.constant 0 : i32
    %c0_i32_2 = arith.constant 0 : i32
    return %c0_i32, %c0_i32_0, %c0_i32_1 : i32, i32, i32
  }
  func.func @transform_7(%arg0: i32) -> (i32, i32, i32) {
    %c0_i32 = arith.constant 0 : i32
    %c0_i32_0 = arith.constant 0 : i32
    %c0_i32_1 = arith.constant 0 : i32
    %c0_i32_2 = arith.constant 0 : i32
    return %c0_i32, %c0_i32_0, %c0_i32_1 : i32, i32, i32
  }
  func.func @transform_8(%arg0: i32) -> (i32, i32, i32) {
    %c0_i32 = arith.constant 0 : i32
    %c0_i32_0 = arith.constant 0 : i32
    %c0_i32_1 = arith.constant 0 : i32
    %c0_i32_2 = arith.constant 0 : i32
    return %c0_i32, %c0_i32_0, %c0_i32_1 : i32, i32, i32
  }
  func.func @transform_9(%arg0: i32) -> (i32, i32) {
    %c0_i32 = arith.constant 0 : i32
    %c0_i32_0 = arith.constant 0 : i32
    %c0_i32_1 = arith.constant 0 : i32
    return %c0_i32, %c0_i32_0 : i32, i32
  }
  func.func @transform_10(%arg0: i32) -> (i32, i32) {
    %c0_i32 = arith.constant 0 : i32
    %c0_i32_0 = arith.constant 0 : i32
    %c0_i32_1 = arith.constant 0 : i32
    return %c0_i32, %c0_i32_0 : i32, i32
  }
  func.func @transform_11(%arg0: i32) -> (i32, i32, i32) {
    %c0_i32 = arith.constant 0 : i32
    %c0_i32_0 = arith.constant 0 : i32
    %c0_i32_1 = arith.constant 0 : i32
    return %arg0, %c0_i32, %c0_i32_0 : i32, i32, i32
  }
  func.func @transform_12(%arg0: i32) -> (i32, i32, i32) {
    %c0_i32 = arith.constant 0 : i32
    %c0_i32_0 = arith.constant 0 : i32
    %c0_i32_1 = arith.constant 0 : i32
    return %arg0, %c0_i32, %c0_i32_0 : i32, i32, i32
  }
  func.func @transform_13(%arg0: i32) -> (i32, i32, i32) {
    %c0_i32 = arith.constant 0 : i32
    %c0_i32_0 = arith.constant 0 : i32
    %c0_i32_1 = arith.constant 0 : i32
    return %arg0, %c0_i32, %c0_i32_0 : i32, i32, i32
  }
  func.func @transform_14(%arg0: i32) -> (i32, i32, i32) {
    %c0_i32 = arith.constant 0 : i32
    %c0_i32_0 = arith.constant 0 : i32
    %c0_i32_1 = arith.constant 0 : i32
    %c0_i32_2 = arith.constant 0 : i32
    return %c0_i32, %c0_i32_0, %c0_i32_1 : i32, i32, i32
  }
}

</mosaic_0001>

<bundles_post_ra>
// kernel: tpu_custom_call.1
= control target key start
LH: loop header
LB: loop body
LE: loop exit
PB: predicated region body
PF: predicated region fallthrough
CT: control target
= control target key end

     0   :  { %20 = vsyncpa [#allocation3], 0  ;;  %s2607_s0 = inlined_call_operand.hbm [shape: f32[1,8,128], index: 0, kind: input, shape index: {}]   ;;  %s2608_s1 = inlined_call_operand.hbm [shape: f32[1,8,128], index: 1, kind: input, shape index: {}]   ;;  %s2609_s2 = inlined_call_operand.hbm [shape: bf16[128,128], index: 2, kind: input, shape index: {}]   ;;  %s2610_s3 = inlined_call_operand.hbm [shape: f32[1,128], index: 3, kind: input, shape index: {}]   ;;  %s2611_s4 = inlined_call_operand.hbm [shape: bf16[2,128,384], index: 4, kind: input, shape index: {}]   ;;  %s2612_s5 = inlined_call_operand.hbm [shape: bf16[2,128,384], index: 5, kind: input, shape index: {}]   ;;  %s2613_s6 = inlined_call_operand.hbm [shape: f32[2,1,384], index: 6, kind: input, shape index: {}]   ;;  %s2614_s7 = inlined_call_operand.vmem [shape: f32[2,1,384], index: 7, kind: input, shape index: {}]   ;;  %s2615_s8 = inlined_call_operand.hbm [shape: f32[2,8,128], index: 8, kind: input, shape index: {}]   ;;  %s2616_s9 = inlined_call_operand.hbm [shape: bf16[128,256], index: 9, kind: input, shape index: {}]   ;;  %s2617_s10 = inlined_call_operand.vmem [shape: f32[1,256], index: 10, kind: input, shape index: {}]   ;;  %s2618_s11 = inlined_call_operand.hbm [shape: f32[1,8,128], index: 11, kind: output, shape index: {0}]   ;;  %s2619_s12 = inlined_call_operand.hbm [shape: f32[1,8,128], index: 12, kind: output, shape index: {1}]   ;;  %s2620_s13 = inlined_call_operand.hbm [shape: f32[1,8,128], index: 13, kind: output, shape index: {2}]   ;;  %s2621_s14 = inlined_call_operand.hbm [shape: f32[2,8,128], index: 14, kind: output, shape index: {3}]  }
   0x1   :  { %21 = vsyncpa [#allocation6], 0 }
   0x2   :  { %22 = vsyncpa [#allocation9], 0 }
   0x3   :  { %23 = vsyncpa [#allocation12], 0 }
   0x4   :  { %24 = vsyncpa [#allocation15], 0 }
   0x5   :  { %25 = vsyncpa [#allocation4], 0 }
   0x6   :  { %26 = vsyncpa [#allocation19], 0  ;;  %s44_s15 = sshll.u32 %s2608_s1, 4  ;;  %s45_s15 = int_to_ptr.hbm [resolvable:$true] %s44_s15 }
   0x7   :  { %27 = vsyncpa [#allocation22], 0  ;;  %s2387_s16 = smov [#allocation5]   ;;  %s68_s20 = sshll.u32 %s2610_s3, 4  ;;  %s69_s20 = int_to_ptr.hbm [resolvable:$true] %s68_s20 }
   0x8   :  { %s46_s17 = sshll.u32 %s2387_s16, 4  ;;  %s2388_s21 = smov [#allocation8]   ;;  %s47_s17 = int_to_ptr.vmem [resolvable:$true] %s46_s17 }
   0x9   :  { %49 = dma.hbm_to_vmem [thread:$0]  %s45_s15, 128, %s47_s17, [#allocation6]  }
   0xa   :  { %s70_s22 = sshll.u32 %s2388_s21, 4  ;;  %s91_s25 = sshll.u32 %s2612_s5, 4  ;;  %s71_s22 = int_to_ptr.vmem [resolvable:$true] %s70_s22  ;;  %s92_s25 = int_to_ptr.hbm [resolvable:$true] %s91_s25 }
   0xb   :  { %73 = dma.hbm_to_vmem [thread:$0]  %s69_s20, 16, %s71_s22, [#allocation9]  }
   0xc   :  { %s2389_s1 = smov [#allocation11]   ;;  %s119_s29 = sshll.u32 %s2615_s8, 4  ;;  %s120_s29 = int_to_ptr.hbm [resolvable:$true] %s119_s29 }
   0xd   :  { %s93_s26 = sshll.u32 %s2389_s1, 4  ;;  %s2390_s30 = smov 192   ;;  %s94_s26 = int_to_ptr.vmem [resolvable:$true] %s93_s26 }
   0xe   :  { %s2391_s3 = smov 12   ;;  %s2392_s15 = smov [#allocation14]  }
   0xf   :  { %99 = dma.hbm_to_vmem [thread:$0]  %s92_s25, 6144, %s94_s26, [#allocation12], %s2390_s30, %s2390_s30, %s2391_s3  }
  0x10   :  { %s121_s16 = sshll.u32 %s2392_s15, 4  ;;  %s2393_s17 = smov 128   ;;  %s122_s16 = int_to_ptr.vmem [resolvable:$true] %s121_s16 }
  0x11   :  { %s2394_s5 = smov 8   ;;  %s33_s8 = sshll.u32 %s2607_s0, 4  ;;  %s34_s8 = int_to_ptr.hbm [resolvable:$true] %s33_s8 }
  0x12   :  { %127 = dma.hbm_to_vmem [thread:$0]  %s120_s29, 256, %s122_s16, [#allocation15], %s2393_s17, %s2393_s17, %s2394_s5  }
  0x13   :  { %s2395_s20 = smov [#allocation2]   ;;  %s54_s24 = sshll.u32 %s2609_s2, 4  ;;  %s55_s24 = int_to_ptr.hbm [resolvable:$true] %s54_s24 }
  0x14   :  { %s35_s21 = sshll.u32 %s2395_s20, 4  ;;  %s2396_s25 = smov [#allocation7]   ;;  %s36_s21 = int_to_ptr.vmem [resolvable:$true] %s35_s21 }
  0x15   :  { %38 = dma.hbm_to_vmem [thread:$0]  %s34_s8, 128, %s36_s21, [#allocation3]  }
  0x16   :  { %s56_s1 = sshll.u32 %s2396_s25, 4  ;;  %s2397_s26 = smov 64   ;;  %s57_s1 = int_to_ptr.vmem [resolvable:$true] %s56_s1 }
  0x17   :  { %s2398_s27 = smov 4   ;;  %s78_s0 = sshll.u32 %s2611_s4, 4  ;;  %s79_s0 = int_to_ptr.hbm [resolvable:$true] %s78_s0 }
  0x18   :  { %62 = dma.hbm_to_vmem [thread:$0]  %s55_s24, 1024, %s57_s1, [#allocation6], %s2397_s26, %s2397_s26, %s2398_s27  }
  0x19   :  { %s2399_s15 = smov [#allocation10]   ;;  %s104_s2 = sshll.u32 %s2613_s6, 4  ;;  %s105_s2 = int_to_ptr.hbm [resolvable:$true] %s104_s2 }
  0x1a   :  { %s80_s16 = sshll.u32 %s2399_s15, 4  ;;  %s2400_s8 = smov [#allocation13]   ;;  %s81_s16 = int_to_ptr.vmem [resolvable:$true] %s80_s16 }
  0x1b   :  { %86 = dma.hbm_to_vmem [thread:$0]  %s79_s0, 6144, %s81_s16, [#allocation9], %s2390_s30, %s2390_s30, %s2391_s3  }
  0x1c   :  { %s106_s20 = sshll.u32 %s2400_s8, 4  ;;  %s2401_s21 = smov 48   ;;  %s107_s20 = int_to_ptr.vmem [resolvable:$true] %s106_s20 }
  0x1d   :  { %s2402_s22 = smov 3   ;;  %s132_s24 = sshll.u32 %s2616_s9, 4  ;;  %s133_s24 = int_to_ptr.hbm [resolvable:$true] %s132_s24 }
  0x1e   :  { %112 = dma.hbm_to_vmem [thread:$0]  %s105_s2, 96, %s107_s20, [#allocation12], %s2401_s21, %s2401_s21, %s2402_s22  }
  0x1f   :  { %s2403_s25 = smov [#allocation16]  }
  0x20   :  { %s134_s1 = sshll.u32 %s2403_s25, 4  ;;  %s135_s1 = int_to_ptr.vmem [resolvable:$true] %s134_s1 }
  0x21   :  { %140 = dma.hbm_to_vmem [thread:$0]  %s133_s24, 2048, %s135_s1, [#allocation15], %s2393_s17, %s2393_s17, %s2394_s5  }
  0x22   :  { %2371 = dma.done.wait [#allocation3], 128  }
  0x23   :  { %2372 = vsyncadd [#allocation3], 4294967168 }
  0x24   :  { %2373 = dma.done.wait [#allocation6], 1152  }
  0x25   :  { %2374 = vsyncadd [#allocation6], 4294966144 }
  0x26   :  { %2375 = dma.done.wait [#allocation9], 6160  }
  0x27   :  { %2376 = vsyncadd [#allocation9], 4294961136 }
  0x28   :  { %2377 = dma.done.wait [#allocation12], 6240  }
  0x29   :  { %2378 = vsyncadd [#allocation12], 4294961056 }
  0x2a   :  { %2379 = dma.done.wait [#allocation15], 2304  }
  0x2b   :  { %2380 = vsyncadd [#allocation15], 4294964992  ;;  %v1902_v0 = vld [vmem:[#allocation7 + $0x38] sm:$0xff]  ;;  %v1901_v1 = vld [vmem:[#allocation7 + $0x30] sm:$0xff]  ;;  %s1380_s27 = sshll.u32 %s2621_s14, 4  ;;  %s2404_s28 = smov [#allocation21]   ;;  %s1381_s27 = int_to_ptr.hbm [resolvable:$true] %s1380_s27 }
  0x2c   :  { %257 = vmatpush.bf16.msra.mxu0 %v1902_v0  ;;  %v1529_v2 = vld [vmem:[#allocation11 + $0xa8] sm:$0xf]  ;;  %v1925_v3 = vld [vmem:[#allocation11 + $0xb0] sm:$0xf0]  ;;  %v1517_v4 = vld [vmem:[#allocation11 + $0x90] sm:$0xf] }
  0x2d   :  { %v1530_v5 = vor.u32 %v1925_v3, %v1529_v2  ;;  %v1922_v6 = vld [vmem:[#allocation11 + $0x98] sm:$0xf0]  ;;  %v1900_v7 = vld [vmem:[#allocation7 + $0x28] sm:$0xff]  ;;  %v1505_v9 = vld [vmem:[#allocation11 + $0x78] sm:$0xf]  ;;  %s1378_s29 = sshll.u32 %s2404_s28, 4  ;;  %s1379_s29 = int_to_ptr.vmem [resolvable:$true] %s1378_s29 }
  0x2e   :  { %v1518_v8 = vor.u32 %v1922_v6, %v1517_v4  ;;  %v1919_v10 = vld [vmem:[#allocation11 + $0x80] sm:$0xf0]  ;;  %v1537_v11 = vld [vmem:[#allocation11 + $0xb0] sm:$0xf]  ;;  %v1926_v12 = vld [vmem:[#allocation11 + $0xb8] sm:$0xf0] }
  0x2f   :  { %482 = vmatpush.bf16.msra.mxu1 %v1530_v5  ;;  %v1538_v13 = vor.u32 %v1926_v12, %v1537_v11  ;;  %v1899_v14 = vld [vmem:[#allocation7 + $0x20] sm:$0xff]  ;;  %v1506_v15 = vor.u32 %v1919_v10, %v1505_v9  ;;  %v1525_v16 = vld [vmem:[#allocation11 + $0x98] sm:$0xf]  ;;  %v1916_v19 = vld [vmem:[#allocation11 + $0x68] sm:$0xf0]  ;;  %s2405_s16 = smov [#allocation18]  }
  0x30   :  { %258 = vmatpush.bf16.msra.mxu0 %v1901_v1  ;;  %v1923_v17 = vld [vmem:[#allocation11 + $0xa0] sm:$0xf0]  ;;  %v1493_v18 = vld [vmem:[#allocation11 + $0x60] sm:$0xf]  ;;  %v1920_v22 = vld [vmem:[#allocation11 + $0x88] sm:$0xf0] }
  0x31   :  { %508 = vmatpush.bf16.msra.mxu3 %v1538_v13  ;;  %v1526_v20 = vor.u32 %v1923_v17, %v1525_v16  ;;  %v1513_v21 = vld [vmem:[#allocation11 + $0x80] sm:$0xf]  ;;  %v1898_v23 = vld [vmem:[#allocation7 + $0x18] sm:$0xff]  ;;  %v1494_v24 = vor.u32 %v1916_v19, %v1493_v18  ;;  %v1481_v25 = vld [vmem:[#allocation11 + $0x48] sm:$0xf]  ;;  %s1357_s18 = sshll.u32 %s2405_s16, 4  ;;  %s1358_s18 = int_to_ptr.vmem [resolvable:$true] %s1357_s18 }
  0x32   :  { %v1913_v26 = vld [vmem:[#allocation11 + $0x50] sm:$0xf0]  ;;  %v1514_v27 = vor.u32 %v1920_v22, %v1513_v21  ;;  %v1501_v28 = vld [vmem:[#allocation11 + $0x68] sm:$0xf]  ;;  %v1469_v32 = vld [vmem:[#allocation11 + $0x30] sm:$0xf] }
  0x33   :  { %483 = vmatpush.bf16.msra.mxu1 %v1518_v8  ;;  %v1917_v29 = vld [vmem:[#allocation11 + $0x70] sm:$0xf0]  ;;  %v1482_v31 = vor.u32 %v1913_v26, %v1481_v25  ;;  %v1910_v33 = vld [vmem:[#allocation11 + $0x38] sm:$0xf0]  ;;  %v1489_v35 = vld [vmem:[#allocation11 + $0x50] sm:$0xf] }
  0x34   :  { %259 = vmatpush.bf16.msra.mxu0 %v1900_v7  ;;  %v1897_v30 = vld [vmem:[#allocation7 + $0x10] sm:$0xff]  ;;  %v1502_v34 = vor.u32 %v1917_v29, %v1501_v28  ;;  %v1914_v36 = vld [vmem:[#allocation11 + $0x58] sm:$0xf0]  ;;  %v1896_v37 = vld [vmem:[#allocation7 + $0x8] sm:$0xff]  ;;  %v1470_v38 = vor.u32 %v1910_v33, %v1469_v32  ;;  %s1359_s8 = sshll.u32 %s2619_s12, 4  ;;  %s2406_s14 = smov [#allocation20]   ;;  %s1360_s8 = int_to_ptr.hbm [resolvable:$true] %s1359_s8 }
  0x35   :  { %509 = vmatpush.bf16.msra.mxu3 %v1526_v20  ;;  %v1457_v39 = vld [vmem:[#allocation11 + $0x18] sm:$0xf]  ;;  %v1907_v40 = vld [vmem:[#allocation11 + $0x20] sm:$0xf0]  ;;  %v1625_v41 = vld [vmem:[#allocation11 + $0x168] sm:$0xf]  ;;  %v1490_v42 = vor.u32 %v1914_v36, %v1489_v35 }
  0x36   :  { %v1924_v43 = vld [vmem:[#allocation11 + $0xac] sm:$0xf]  ;;  %v1531_v44 = vld [vmem:[#allocation11 + $0xb4] sm:$0xf0]  ;;  %v1949_v45 = vld [vmem:[#allocation11 + $0x170] sm:$0xf0]  ;;  %v1458_v51 = vor.u32 %v1907_v40, %v1457_v39 }
  0x37   :  { %484 = vmatpush.bf16.msra.mxu1 %v1506_v15  ;;  %v1477_v46 = vld [vmem:[#allocation11 + $0x38] sm:$0xf]  ;;  %v1911_v47 = vld [vmem:[#allocation11 + $0x40] sm:$0xf0]  ;;  %v1534_v48 = vor.u32 %v1924_v43, %v1531_v44  ;;  %v187_v50 = vld [vmem:[#allocation2] sm:$0xff]  ;;  %v1626_v54 = vor.u32 %v1949_v45, %v1625_v41  ;;  %s1368_s20 = sshll.u32 %s2406_s14, 4  ;;  %s1369_s20 = int_to_ptr.vmem [resolvable:$true] %s1368_s20 }
  0x38   :  { %260 = vmatpush.bf16.msra.mxu0 %v1899_v14  ;;  %v1895_v49 = vld [vmem:[#allocation7] sm:$0xff]  ;;  %v1904_v53 = vld [vmem:[#allocation11 + $0x8] sm:$0xf0]  ;;  %v1478_v56 = vor.u32 %v1911_v47, %v1477_v46  ;;  %v1921_v57 = vld [vmem:[#allocation11 + $0x94] sm:$0xf]  ;;  %v188_v63 = vpack.c.bf16 %v187_v50, %v187_v50  ;;  %s1370_s21 = sshll.u32 %s2620_s13, 4  ;;  %s1371_s21 = int_to_ptr.hbm [resolvable:$true] %s1370_s21 }
  0x39   :  { %510 = vmatpush.bf16.msra.mxu3 %v1514_v27  ;;  %v1445_v52 = vld [vmem:[#allocation11] sm:$0xf]  ;;  %v1948_v55 = vld [vmem:[#allocation11 + $0x16c] sm:$0xf]  ;;  %495 = vmatpush.bf16.msra.mxu2 %v1534_v48  ;;  %v1627_v59 = vld [vmem:[#allocation11 + $0x174] sm:$0xf0] }
  0x3a   :  { %v1519_v58 = vld [vmem:[#allocation11 + $0x9c] sm:$0xf0]  ;;  %v1613_v60 = vld [vmem:[#allocation11 + $0x150] sm:$0xf]  ;;  %v1946_v61 = vld [vmem:[#allocation11 + $0x158] sm:$0xf0]  ;;  %v1446_v2 = vor.u32 %v1904_v53, %v1445_v52  ;;  %v1630_v4 = vor.u32 %v1948_v55, %v1627_v59 }
  0x3b   :  { %485 = vmatpush.bf16.msra.mxu1 %v1494_v24  ;;  %v1522_v62 = vor.u32 %v1921_v57, %v1519_v58  ;;  %v1465_v0 = vld [vmem:[#allocation11 + $0x20] sm:$0xf]  ;;  %v1908_v1 = vld [vmem:[#allocation11 + $0x28] sm:$0xf0]  ;;  %v1614_v5 = vor.u32 %v1946_v61, %v1613_v60  ;;  %v1945_v6 = vld [vmem:[#allocation11 + $0x154] sm:$0xf] }
  0x3c   :  { %261 = vmatpush.bf16.msra.mxu0 %v1898_v23  ;;  %v2522_v3 = vld [vmem:[#allocation14] sm:$0xff]  ;;  %v1615_v7 = vld [vmem:[#allocation11 + $0x15c] sm:$0xf0]  ;;  %v1601_v8 = vld [vmem:[#allocation11 + $0x138] sm:$0xf]  ;;  %v1466_v10 = vor.u32 %v1908_v1, %v1465_v0  ;;  %s1348_s13 = sshll.u32 %s2618_s11, 4  ;;  %s1349_s13 = int_to_ptr.hbm [resolvable:$true] %s1348_s13 }
  0x3d   :  { %511 = vmatpush.bf16.msra.mxu3 %v1502_v34  ;;  %v1943_v9 = vld [vmem:[#allocation11 + $0x140] sm:$0xf0]  ;;  %496 = vmatpush.bf16.msra.mxu2 %v1522_v62  ;;  %v1453_v11 = vld [vmem:[#allocation11 + $0x8] sm:$0xf]  ;;  %v2526_v12 = vpack.c.bf16 %v2522_v3, %v2522_v3  ;;  %v1905_v13 = vld [vmem:[#allocation11 + $0x10] sm:$0xf0]  ;;  %v1618_v19 = vor.u32 %v1945_v6, %v1615_v7 }
  0x3e   :  { %v1918_v14 = vld [vmem:[#allocation11 + $0x7c] sm:$0xf]  ;;  %v1507_v15 = vld [vmem:[#allocation11 + $0x84] sm:$0xf0]  ;;  %v1973_v17 = vld [vmem:[#allocation10 + $0xb0] sm:$0xf0]  ;;  %v1602_v20 = vor.u32 %v1943_v9, %v1601_v8  ;;  %v1454_v25 = vor.u32 %v1905_v13, %v1453_v11 }
  0x3f   :  { %486 = vmatpush.bf16.msra.mxu1 %v1482_v31  ;;  %v1721_v16 = vld [vmem:[#allocation10 + $0xa8] sm:$0xf]  ;;  %v1510_v18 = vor.u32 %v1918_v14, %v1507_v15  ;;  %v1942_v21 = vld [vmem:[#allocation11 + $0x13c] sm:$0xf]  ;;  %v1589_v23 = vld [vmem:[#allocation11 + $0x120] sm:$0xf] }
  0x40   :  { %262 = vmatpush.bf16.msra.mxu0 %v1897_v30  ;;  %v1603_v22 = vld [vmem:[#allocation11 + $0x144] sm:$0xf0]  ;;  %v1940_v24 = vld [vmem:[#allocation11 + $0x128] sm:$0xf0]  ;;  %v1915_v26 = vld [vmem:[#allocation11 + $0x64] sm:$0xf]  ;;  %v1722_v28 = vor.u32 %v1973_v17, %v1721_v16 }
  0x41   :  { %512 = vmatpush.bf16.msra.mxu3 %v1490_v42  ;;  %497 = vmatpush.bf16.msra.mxu2 %v1510_v18  ;;  %v1495_v27 = vld [vmem:[#allocation11 + $0x6c] sm:$0xf0]  ;;  %v1970_v31 = vld [vmem:[#allocation10 + $0x98] sm:$0xf0]  ;;  %v1606_v32 = vor.u32 %v1942_v21, %v1603_v22  ;;  %v1590_v33 = vor.u32 %v1940_v24, %v1589_v23  ;;  %v1939_v34 = vld [vmem:[#allocation11 + $0x124] sm:$0xf] }
  0x42   :  { %v1498_v29 = vor.u32 %v1915_v26, %v1495_v27  ;;  %v1709_v30 = vld [vmem:[#allocation10 + $0x90] sm:$0xf]  ;;  %v1577_v36 = vld [vmem:[#allocation11 + $0x108] sm:$0xf]  ;;  %v1483_v39 = vld [vmem:[#allocation11 + $0x54] sm:$0xf0] }
  0x43   :  { %487 = vmatpush.bf16.msra.mxu1 %v1470_v38  ;;  %v1591_v35 = vld [vmem:[#allocation11 + $0x12c] sm:$0xf0]  ;;  %v1912_v38 = vld [vmem:[#allocation11 + $0x4c] sm:$0xf]  ;;  %v1710_v40 = vor.u32 %v1970_v31, %v1709_v30  ;;  %v1697_v42 = vld [vmem:[#allocation10 + $0x78] sm:$0xf] }
  0x44   :  { %263 = vmatpush.bf16.msra.mxu0 %v1896_v37  ;;  %v1937_v37 = vld [vmem:[#allocation11 + $0x110] sm:$0xf0]  ;;  %v1486_v41 = vor.u32 %v1912_v38, %v1483_v39  ;;  %v1967_v43 = vld [vmem:[#allocation10 + $0x80] sm:$0xf0]  ;;  %v1594_v44 = vor.u32 %v1939_v34, %v1591_v35  ;;  %v1936_v46 = vld [vmem:[#allocation11 + $0x10c] sm:$0xf] }
  0x45   :  { %513 = vmatpush.bf16.msra.mxu3 %v1478_v56  ;;  %498 = vmatpush.bf16.msra.mxu2 %v1498_v29  ;;  %v1578_v45 = vor.u32 %v1937_v37, %v1577_v36  ;;  %v1579_v47 = vld [vmem:[#allocation11 + $0x114] sm:$0xf0]  ;;  %v1565_v48 = vld [vmem:[#allocation11 + $0xf0] sm:$0xf]  ;;  %v1909_v50 = vld [vmem:[#allocation11 + $0x34] sm:$0xf]  ;;  %v1698_v52 = vor.u32 %v1967_v43, %v1697_v42 }
  0x46   :  { %v1964_v55 = vld [vmem:[#allocation10 + $0x68] sm:$0xf0]  ;;  %v1582_v56 = vor.u32 %v1936_v46, %v1579_v47  ;;  %v1933_v58 = vld [vmem:[#allocation11 + $0xf4] sm:$0xf]  ;;  %v1567_v59 = vld [vmem:[#allocation11 + $0xfc] sm:$0xf0] }
  0x47   :  { %488 = vmatpush.bf16.msra.mxu1 %v1458_v51  ;;  %v1471_v51 = vld [vmem:[#allocation11 + $0x3c] sm:$0xf0]  ;;  %v1553_v60 = vld [vmem:[#allocation11 + $0xd8] sm:$0xf]  ;;  %v1931_v61 = vld [vmem:[#allocation11 + $0xe0] sm:$0xf0] }
  0x48   :  { %264 = vmatpush.bf16.msra.mxu0 %v1895_v49  ;;  %v1934_v49 = vld [vmem:[#allocation11 + $0xf8] sm:$0xf0]  ;;  %v1474_v53 = vor.u32 %v1909_v50, %v1471_v51  ;;  %v1554_v6 = vor.u32 %v1931_v61, %v1553_v60  ;;  %v1555_v8 = vld [vmem:[#allocation11 + $0xe4] sm:$0xf0]  ;;  %v1541_v9 = vld [vmem:[#allocation11 + $0xc0] sm:$0xf] }
  0x49   :  { %514 = vmatpush.bf16.msra.mxu3 %v1466_v10  ;;  %499 = vmatpush.bf16.msra.mxu2 %v1486_v41  ;;  %v1566_v57 = vor.u32 %v1934_v49, %v1565_v48  ;;  %v1906_v62 = vld [vmem:[#allocation11 + $0x1c] sm:$0xf]  ;;  %v1928_v10 = vld [vmem:[#allocation11 + $0xc8] sm:$0xf0]  ;;  %v1903_v11 = vld [vmem:[#allocation11 + $0x4] sm:$0xf] }
  0x4a   :  { %v1930_v7 = vld [vmem:[#allocation11 + $0xdc] sm:$0xf]  ;;  %v1447_v13 = vld [vmem:[#allocation11 + $0xc] sm:$0xf0]  ;;  %v1972_v14 = vld [vmem:[#allocation10 + $0xac] sm:$0xf]  ;;  %v1542_v21 = vor.u32 %v1928_v10, %v1541_v9 }
  0x4b   :  { %265 = vmatmul.bf16.vlgmr.msra.gmra.mxu0 %v188_v63  ;;  %489 = vmatpush.bf16.msra.mxu1 %v1446_v2  ;;  %v1459_v63 = vld [vmem:[#allocation11 + $0x24] sm:$0xf0]  ;;  %v1723_v15 = vld [vmem:[#allocation10 + $0xb4] sm:$0xf0]  ;;  %v1450_v17 = vor.u32 %v1903_v11, %v1447_v13  ;;  %v1661_v18 = vld [vmem:[#allocation10 + $0x30] sm:$0xf] }
  0x4c   :  { %649 = vmatpush.bf16.msrb.mxu0 %v1626_v54  ;;  %v1685_v54 = vld [vmem:[#allocation10 + $0x60] sm:$0xf]  ;;  %v1462_v1 = vor.u32 %v1906_v62, %v1459_v63  ;;  %v1673_v2 = vld [vmem:[#allocation10 + $0x48] sm:$0xf]  ;;  %v2530_v22 = vld [vmem:[#allocation14 + $0x8] sm:$0xff] }
  0x4d   :  { %515 = vmatpush.bf16.msra.mxu3 %v1454_v25  ;;  %500 = vmatpush.bf16.msra.mxu2 %v1474_v53  ;;  %v1686_v0 = vor.u32 %v1964_v55, %v1685_v54  ;;  %v1927_v23 = vld [vmem:[#allocation11 + $0xc4] sm:$0xf]  ;;  %v1543_v24 = vld [vmem:[#allocation11 + $0xcc] sm:$0xf0]  ;;  %v1726_v25 = vor.u32 %v1972_v14, %v1723_v15  ;;  %v1974_v27 = vld [vmem:[#allocation10 + $0xb8] sm:$0xf0]  ;;  %v2534_v31 = vpack.c.bf16 %v2530_v22, %v2530_v22 }
  0x4e   :  { %490 = vmatmul.bf16.vlgmr.msra.gmra.mxu1 %v2526_v12  ;;  %v1729_v26 = vld [vmem:[#allocation10 + $0xb0] sm:$0xf]  ;;  %v1711_v29 = vld [vmem:[#allocation10 + $0x9c] sm:$0xf0]  ;;  %v1546_v34 = vor.u32 %v1927_v23, %v1543_v24  ;;  %v1717_v37 = vld [vmem:[#allocation10 + $0x98] sm:$0xf] }
  0x4f   :  { %662 = vmatpush.bf16.msrb.mxu1 %v1630_v4  ;;  %v1961_v4 = vld [vmem:[#allocation10 + $0x50] sm:$0xf0]  ;;  %v1730_v35 = vor.u32 %v1974_v27, %v1729_v26  ;;  %v1971_v38 = vld [vmem:[#allocation10 + $0xa0] sm:$0xf0]  ;;  %v1966_v39 = vld [vmem:[#allocation10 + $0x7c] sm:$0xf] }
  0x50   :  { %650 = vmatpush.bf16.msrb.mxu0 %v1614_v5  ;;  %516 = vmatmul.bf16.vlgmr.msra.gmra.mxu3 %v2526_v12  ;;  %v1570_v5 = vor.u32 %v1933_v58, %v1567_v59  ;;  %v1674_v16 = vor.u32 %v1961_v4, %v1673_v2  ;;  %v1718_v42 = vor.u32 %v1971_v38, %v1717_v37  ;;  %v1963_v46 = vld [vmem:[#allocation10 + $0x64] sm:$0xf]  ;;  %v1687_v47 = vld [vmem:[#allocation10 + $0x6c] sm:$0xf0]  ;;  %v1693_v49 = vld [vmem:[#allocation10 + $0x68] sm:$0xf] }
  0x51   :  { %857 = vmatpush.bf16.msrb.mxu3 %v1722_v28  ;;  %501 = vmatpush.bf16.msra.mxu2 %v1462_v1  ;;  %v1969_v28 = vld [vmem:[#allocation10 + $0x94] sm:$0xf]  ;;  %v1690_v48 = vor.u32 %v1963_v46, %v1687_v47  ;;  %v1960_v51 = vld [vmem:[#allocation10 + $0x4c] sm:$0xf]  ;;  %v1681_v55 = vld [vmem:[#allocation10 + $0x50] sm:$0xf] }
  0x52   :  { %v1714_v36 = vor.u32 %v1969_v28, %v1711_v29  ;;  %v1965_v50 = vld [vmem:[#allocation10 + $0x70] sm:$0xf0]  ;;  %v1663_v58 = vld [vmem:[#allocation10 + $0x3c] sm:$0xf0]  ;;  %v1669_v61 = vld [vmem:[#allocation10 + $0x38] sm:$0xf] }
  0x53   :  { %663 = vmatpush.bf16.msrb.mxu1 %v1618_v19  ;;  %v1958_v19 = vld [vmem:[#allocation10 + $0x38] sm:$0xf0]  ;;  %v1694_v53 = vor.u32 %v1965_v50, %v1693_v49  ;;  %v1959_v62 = vld [vmem:[#allocation10 + $0x40] sm:$0xf0]  ;;  %v1657_v4 = vld [vmem:[#allocation10 + $0x20] sm:$0xf] }
  0x54   :  { %651 = vmatpush.bf16.msrb.mxu0 %v1602_v20  ;;  %v1558_v20 = vor.u32 %v1930_v7, %v1555_v8  ;;  %v1662_v30 = vor.u32 %v1958_v19, %v1661_v18  ;;  %v1954_v63 = vld [vmem:[#allocation10 + $0x1c] sm:$0xf]  ;;  %v1670_v1 = vor.u32 %v1959_v62, %v1669_v61  ;;  %v1637_v7 = vld [vmem:[#allocation10] sm:$0xf]  ;;  %v1952_v8 = vld [vmem:[#allocation10 + $0x8] sm:$0xf0] }
  0x55   :  { %858 = vmatpush.bf16.msrb.mxu3 %v1710_v40  ;;  %502 = vmatpush.bf16.msra.mxu2 %v1450_v17  ;;  %v1699_v40 = vld [vmem:[#allocation10 + $0x84] sm:$0xf0]  ;;  %v1951_v9 = vld [vmem:[#allocation10 + $0x4] sm:$0xf]  ;;  %v1638_v10 = vor.u32 %v1952_v8, %v1637_v7  ;;  %v1639_v11 = vld [vmem:[#allocation10 + $0xc] sm:$0xf0] }
  0x56   :  { %v1702_v43 = vor.u32 %v1966_v39, %v1699_v40  ;;  %v1645_v13 = vld [vmem:[#allocation10 + $0x8] sm:$0xf]  ;;  %v1953_v14 = vld [vmem:[#allocation10 + $0x10] sm:$0xf0]  ;;  %v1642_v15 = vor.u32 %v1951_v9, %v1639_v11  ;;  %v2036_v17 = vld [vmem:[#allocation8] ss:$0 sm:$0xff] }
  0x57   :  { %664 = vmatpush.bf16.msrb.mxu1 %v1606_v32  ;;  %v1649_v32 = vld [vmem:[#allocation10 + $0x18] sm:$0xf]  ;;  %v1633_v24 = vld [vmem:[#allocation11 + $0x170] sm:$0xf]  ;;  %v1947_v28 = vld [vmem:[#allocation11 + $0x160] sm:$0xf0] }
  0x58   :  { %652 = vmatpush.bf16.msrb.mxu0 %v1590_v33  ;;  %v1955_v33 = vld [vmem:[#allocation10 + $0x20] sm:$0xf0]  ;;  %503 = vmatmul.bf16.vlgmr.msra.gmra.mxu2 %v2526_v12  ;;  %v1621_v27 = vld [vmem:[#allocation11 + $0x158] sm:$0xf]  ;;  %v1609_v40 = vld [vmem:[#allocation11 + $0x140] sm:$0xf] }
  0x59   :  { %859 = vmatpush.bf16.msrb.mxu3 %v1698_v52  ;;  %v1650_v41 = vor.u32 %v1955_v33, %v1649_v32  ;;  %v1675_v52 = vld [vmem:[#allocation10 + $0x54] sm:$0xf0]  ;;  %v1585_v46 = vld [vmem:[#allocation11 + $0x110] sm:$0xf]  ;;  %v1938_v47 = vld [vmem:[#allocation11 + $0x118] sm:$0xf0] }
  0x5a   :  { %v1678_v54 = vor.u32 %v1960_v51, %v1675_v52  ;;  %v1935_v49 = vld [vmem:[#allocation11 + $0x100] sm:$0xf0]  ;;  %v1561_v51 = vld [vmem:[#allocation11 + $0xe0] sm:$0xf]  ;;  %v1932_v52 = vld [vmem:[#allocation11 + $0xe8] sm:$0xf0] }
  0x5b   :  { %665 = vmatpush.bf16.msrb.mxu1 %v1594_v44  ;;  %v1705_v44 = vld [vmem:[#allocation10 + $0x80] sm:$0xf]  ;;  %v1821_v61 = vld [vmem:[#allocation10 + $0x174] sm:$0xf0]  ;;  %v1827_v62 = vld [vmem:[#allocation10 + $0x170] sm:$0xf] }
  0x5c   :  { %653 = vmatpush.bf16.msrb.mxu0 %v1578_v45  ;;  %v1968_v45 = vld [vmem:[#allocation10 + $0x88] sm:$0xf0]  ;;  %v1994_v7 = vld [vmem:[#allocation10 + $0x158] sm:$0xf0]  ;;  %v1993_v8 = vld [vmem:[#allocation10 + $0x154] sm:$0xf] }
  0x5d   :  { %860 = vmatpush.bf16.msrb.mxu3 %v1686_v0  ;;  %v1706_v12 = vor.u32 %v1968_v45, %v1705_v44  ;;  %v1651_v0 = vld [vmem:[#allocation10 + $0x24] sm:$0xf0]  ;;  %v1941_v44 = vld [vmem:[#allocation11 + $0x130] sm:$0xf0]  ;;  %v1815_v11 = vld [vmem:[#allocation10 + $0x158] sm:$0xf] }
  0x5e   :  { %v1654_v2 = vor.u32 %v1954_v63, %v1651_v0  ;;  %v1998_v63 = vld [vmem:[#allocation10 + $0x178] sm:$0xf0]  ;;  %v2550_v0 = vld [vmem:[%s2614_s7] sm:$0x7] }
  0x5f   :  { %666 = vmatpush.bf16.msrb.mxu1 %v1582_v56  ;;  %v1962_v56 = vld [vmem:[#allocation10 + $0x58] sm:$0xf0] }
  0x60   :  { %654 = vmatpush.bf16.msrb.mxu0 %v1566_v57  ;;  %v1957_v57 = vld [vmem:[#allocation10 + $0x34] sm:$0xf]  ;;  %v1682_v59 = vor.u32 %v1962_v56, %v1681_v55 }
  0x61   :  { %861 = vmatpush.bf16.msrb.mxu3 %v1674_v16  ;;  %v1666_v60 = vor.u32 %v1957_v57, %v1663_v58  ;;  %v1646_v16 = vor.u32 %v1953_v14, %v1645_v13  ;;  %v1929_v55 = vld [vmem:[#allocation11 + $0xd0] sm:$0xf0]  ;;  %v1819_v57 = vld [vmem:[#allocation10 + $0x168] sm:$0xf]  ;;  %v1995_v13 = vld [vmem:[#allocation10 + $0x160] sm:$0xf0] }
  0x62   :  { %v1997_v58 = vld [vmem:[#allocation10 + $0x170] sm:$0xf0] }
  0x63   :  { %667 = vmatpush.bf16.msrb.mxu1 %v1570_v5  ;;  %v1956_v5 = vld [vmem:[#allocation10 + $0x28] sm:$0xf0] }
  0x64   :  { %655 = vmatpush.bf16.msrb.mxu0 %v1554_v6  ;;  %v1658_v6 = vor.u32 %v1956_v5, %v1657_v4  ;;  %v343_v4 = vperm.slane %v2550_v0, 1  ;;  %v2553_v5 = vld [vmem:[#allocation13] sm:$0x7] }
  0x65   :  { %862 = vmatpush.bf16.msrb.mxu3 %v1662_v30  ;;  %v1622_v30 = vor.u32 %v1947_v28, %v1621_v27  ;;  %v724_v14 = vperm.slane %v2553_v5, 1  ;;  %v1992_v27 = vld [vmem:[#allocation10 + $0x148] sm:$0xf0]  ;;  %v342_v28 = vperm.slane %v2550_v0, 0 }
  0x67   :  { %668 = vmatpush.bf16.msrb.mxu1 %v1558_v20 }
  0x68   :  { %656 = vmatpush.bf16.msrb.mxu0 %v1542_v21 }
  0x69   :  { %863 = vmatpush.bf16.msrb.mxu3 %v1650_v41  ;;  %v1944_v41 = vld [vmem:[#allocation11 + $0x148] sm:$0xf0] }
  0x6b   :  { %657 = vmatmul.bf16.vlgmr.msrb.gmra.mxu0 %v2534_v31  ;;  %669 = vmatpush.bf16.msrb.mxu1 %v1546_v34 }
  0x6c   :  { %870 = vmatpush.bf16.msra.mxu0 %v1726_v25  ;;  %v1950_v25 = vld [vmem:[#allocation11 + $0x178] sm:$0xf0] }
  0x6d   :  { %864 = vmatpush.bf16.msrb.mxu3 %v1638_v10  ;;  %v1634_v26 = vor.u32 %v1950_v25, %v1633_v24  ;;  %v1809_v10 = vld [vmem:[#allocation10 + $0x15c] sm:$0xf0]  ;;  %v1797_v25 = vld [vmem:[#allocation10 + $0x144] sm:$0xf0] }
  0x6e   :  { %670 = vmatmul.bf16.vlgmr.msrb.gmra.mxu1 %v2534_v31 }
  0x6f   :  { %883 = vmatpush.bf16.msra.mxu1 %v1730_v35  ;;  %675 = vmatpush.bf16.msrb.mxu2 %v1634_v26  ;;  %v1803_v26 = vld [vmem:[#allocation10 + $0x140] sm:$0xf] }
  0x70   :  { %871 = vmatpush.bf16.msra.mxu0 %v1714_v36 }
  0x73   :  { %884 = vmatpush.bf16.msra.mxu1 %v1718_v42  ;;  %676 = vmatpush.bf16.msrb.mxu2 %v1622_v30  ;;  %v1610_v42 = vor.u32 %v1944_v41, %v1609_v40  ;;  %v1987_v40 = vld [vmem:[#allocation10 + $0x124] sm:$0xf] }
  0x74   :  { %872 = vmatpush.bf16.msra.mxu0 %v1702_v43  ;;  %v1597_v43 = vld [vmem:[#allocation11 + $0x128] sm:$0xf] }
  0x75   :  { %v1598_v45 = vor.u32 %v1941_v44, %v1597_v43  ;;  %v1791_v43 = vld [vmem:[#allocation10 + $0x128] sm:$0xf]  ;;  %v1989_v44 = vld [vmem:[#allocation10 + $0x130] sm:$0xf0] }
  0x77   :  { %885 = vmatpush.bf16.msra.mxu1 %v1706_v12  ;;  %677 = vmatpush.bf16.msrb.mxu2 %v1610_v42  ;;  %v1586_v12 = vor.u32 %v1938_v47, %v1585_v46  ;;  %v1785_v42 = vld [vmem:[#allocation10 + $0x12c] sm:$0xf0] }
  0x78   :  { %873 = vmatpush.bf16.msra.mxu0 %v1690_v48  ;;  %v1573_v48 = vld [vmem:[#allocation11 + $0xf8] sm:$0xf]  ;;  %v1788_v47 = vor.u32 %v1987_v40, %v1785_v42 }
  0x79   :  { %v1574_v50 = vor.u32 %v1935_v49, %v1573_v48  ;;  %v1771_v49 = vld [vmem:[#allocation10 + $0x108] sm:$0xf] }
  0x7b   :  { %886 = vmatpush.bf16.msra.mxu1 %v1694_v53  ;;  %678 = vmatpush.bf16.msrb.mxu2 %v1598_v45  ;;  %v1562_v53 = vor.u32 %v1932_v52, %v1561_v51  ;;  %v1984_v51 = vld [vmem:[#allocation10 + $0x10c] sm:$0xf] }
  0x7c   :  { %874 = vmatpush.bf16.msra.mxu0 %v1678_v54  ;;  %v1549_v54 = vld [vmem:[#allocation11 + $0xc8] sm:$0xf] }
  0x7d   :  { %v1550_v56 = vor.u32 %v1929_v55, %v1549_v54  ;;  %v1773_v54 = vld [vmem:[#allocation10 + $0x114] sm:$0xf0]  ;;  %v1779_v55 = vld [vmem:[#allocation10 + $0x110] sm:$0xf] }
  0x7f   :  { %887 = vmatpush.bf16.msra.mxu1 %v1682_v59  ;;  %679 = vmatpush.bf16.msrb.mxu2 %v1586_v12  ;;  %v1996_v59 = vld [vmem:[#allocation10 + $0x16c] sm:$0xf]  ;;  %v1792_v12 = vor.u32 %v1989_v44, %v1791_v43 }
  0x80   :  { %875 = vmatpush.bf16.msra.mxu0 %v1666_v60  ;;  %v1820_v60 = vor.u32 %v1997_v58, %v1819_v57  ;;  %v1776_v58 = vor.u32 %v1984_v51, %v1773_v54 }
  0x83   :  { %888 = vmatpush.bf16.msra.mxu1 %v1670_v1  ;;  %680 = vmatpush.bf16.msrb.mxu2 %v1574_v50  ;;  %v1824_v1 = vor.u32 %v1996_v59, %v1821_v61  ;;  %v1985_v50 = vld [vmem:[#allocation10 + $0x110] sm:$0xf0] }
  0x84   :  { %876 = vmatpush.bf16.msra.mxu0 %v1654_v2  ;;  %v1828_v2 = vor.u32 %v1998_v63, %v1827_v62  ;;  %v1981_v61 = vld [vmem:[#allocation10 + $0xf4] sm:$0xf] }
  0x85   :  { %1128 = vmatpush.bf16.msra.mxu3 %v1824_v1  ;;  %v1761_v1 = vld [vmem:[#allocation10 + $0xfc] sm:$0xf0] }
  0x87   :  { %889 = vmatpush.bf16.msra.mxu1 %v1658_v6  ;;  %681 = vmatpush.bf16.msrb.mxu2 %v1562_v53  ;;  %v1807_v6 = vld [vmem:[#allocation10 + $0x150] sm:$0xf]  ;;  %v1772_v53 = vor.u32 %v1985_v50, %v1771_v49  ;;  %v725_v50 = vperm.slane %v2553_v5, 2 }
  0x88   :  { %877 = vmatpush.bf16.msra.mxu0 %v1642_v15  ;;  %v1808_v9 = vor.u32 %v1994_v7, %v1807_v6  ;;  %v1812_v15 = vor.u32 %v1993_v8, %v1809_v10  ;;  %v1747_v7 = vld [vmem:[#allocation10 + $0xd8] sm:$0xf] }
  0x8a   :  { %1129 = vmatpush.bf16.msra.mxu3 %v1812_v15  ;;  %v1755_v15 = vld [vmem:[#allocation10 + $0xe0] sm:$0xf] }
  0x8b   :  { %890 = vmatpush.bf16.msra.mxu1 %v1646_v16  ;;  %682 = vmatpush.bf16.msrb.mxu2 %v1550_v56  ;;  %v1816_v16 = vor.u32 %v1995_v13, %v1815_v11  ;;  %v1986_v56 = vld [vmem:[#allocation10 + $0x118] sm:$0xf0]  ;;  %v1979_v11 = vld [vmem:[#allocation10 + $0xe0] sm:$0xf0] }
  0x8c   :  { %1141 = vmatpush.bf16.msrb.mxu0 %v1828_v2  ;;  %v1780_v59 = vor.u32 %v1986_v56, %v1779_v55  ;;  %v1767_v2 = vld [vmem:[#allocation10 + $0xf8] sm:$0xf]  ;;  %v1978_v13 = vld [vmem:[#allocation10 + $0xdc] sm:$0xf] }
  0x8e   :  { %683 = vmatmul.bf16.vlgmr.msrb.gmra.mxu2 %v2534_v31 }
  0x8f   :  { %1115 = vmatpush.bf16.msra.mxu2 %v1820_v60  ;;  %v1982_v60 = vld [vmem:[#allocation10 + $0xf8] sm:$0xf0] }
  0x90   :  { %1142 = vmatpush.bf16.msrb.mxu0 %v1816_v16  ;;  %v1980_v16 = vld [vmem:[#allocation10 + $0xe8] sm:$0xf0] }
  0x93   :  { %1116 = vmatpush.bf16.msra.mxu2 %v1808_v9  ;;  %v1764_v9 = vor.u32 %v1981_v61, %v1761_v1 }
  0xc8   :  { %v266_v18 = vpop.f32.mrf.mxu0 }
  0xc9   :  { %v267_v19 = vadd.f32 %v2036_v17, %v266_v18  ;;  %v1795_v18 = vld [vmem:[#allocation10 + $0x138] sm:$0xf] }
  0xcb   :  { %v688_v20 = vpack.c.bf16 %v267_v19, %v267_v19  ;;  %v2539_v21 = vpop.f32.mrf.mxu1  ;;  %v1991_v19 = vld [vmem:[#allocation10 + $0x140] sm:$0xf0] }
  0xcc   :  { %v1796_v24 = vor.u32 %v1991_v19, %v1795_v18  ;;  %v492_v45 = vadd.f32 %v2539_v21, %v342_v28  ;;  %v1759_v21 = vld [vmem:[#allocation10 + $0xf0] sm:$0xf] }
  0xcd   :  { %865 = vmatmul.bf16.vlgmr.msrb.gmra.mxu3 %v688_v20  ;;  %878 = vmatmul.bf16.vlgmr.msra.gmra.mxu0 %v688_v20  ;;  %v1760_v6 = vor.u32 %v1982_v60, %v1759_v21  ;;  %v1737_v28 = vld [vmem:[#allocation10 + $0xcc] sm:$0xf0] }
  0xce   :  { %891 = vmatmul.bf16.vlgmr.msra.gmra.mxu1 %v688_v20  ;;  %v1990_v20 = vld [vmem:[#allocation10 + $0x13c] sm:$0xf]  ;;  %1117 = vmatpush.bf16.msra.mxu2 %v1796_v24  ;;  %v1756_v24 = vor.u32 %v1980_v16, %v1755_v15 }
  0xcf   :  { %v1800_v30 = vor.u32 %v1990_v20, %v1797_v25  ;;  %v1748_v20 = vor.u32 %v1979_v11, %v1747_v7  ;;  %v1735_v25 = vld [vmem:[#allocation10 + $0xc0] sm:$0xf]  ;;  %v1889_v7 = vld [vmem:[#allocation16 + $0x70] sm:$0xf]  ;;  %v1891_v11 = vld [vmem:[#allocation16 + $0x78] sm:$0xf0] }
  0xd0   :  { %v268_v23 = vpop.f32.mrf.mxu0  ;;  %v2012_v15 = vld [vmem:[#allocation16 + $0x64] sm:$0xf0] }
  0xd1   :  { %1130 = vmatpush.bf16.msra.mxu3 %v1800_v30  ;;  %v1977_v30 = vld [vmem:[#allocation10 + $0xd0] sm:$0xf0] }
  0xd3   :  { %v493_v29 = vpop.f32.mrf.mxu1  ;;  %v2541_v32 = vpop.f32.mrf.mxu3 }
  0xd5   :  { %1131 = vmatpush.bf16.msra.mxu3 %v1788_v47  ;;  %v344_v47 = vperm.slane %v2550_v0, 2 }
  0xd9   :  { %1132 = vmatpush.bf16.msra.mxu3 %v1776_v58 }
  0xdb   :  { %v519_v33 = vpop.f32.mrf.mxu3  ;;  %v504_v36 = vpop.f32.mrf.mxu2 }
  0xdc   :  { %v505_v17 = vadd.f32 %v504_v36, %v343_v4  ;;  %v1804_v33 = vor.u32 %v1992_v27, %v1803_v26  ;;  %v1983_v4 = vld [vmem:[#allocation10 + $0x100] sm:$0xf0]  ;;  %v1976_v26 = vld [vmem:[#allocation10 + $0xc8] sm:$0xf0] }
  0xdd   :  { %v1768_v10 = vor.u32 %v1983_v4, %v1767_v2  ;;  %1133 = vmatpush.bf16.msra.mxu3 %v1764_v9  ;;  %v1975_v27 = vld [vmem:[#allocation10 + $0xc4] sm:$0xf]  ;;  %v2013_v9 = vld [vmem:[#allocation16 + $0x74] sm:$0xf] }
  0xde   :  { %1143 = vmatpush.bf16.msrb.mxu0 %v1804_v33  ;;  %v1736_v33 = vor.u32 %v1976_v26, %v1735_v25  ;;  %v1875_v26 = vld [vmem:[#allocation16 + $0x58] sm:$0xf0] }
  0xe2   :  { %1144 = vmatpush.bf16.msrb.mxu0 %v1792_v12 }
  0xe3   :  { %v506_v39 = vpop.f32.mrf.mxu2 }
  0xe4   :  { %v1988_v39 = vld [vmem:[#allocation10 + $0x128] sm:$0xf0] }
  0xe6   :  { %1145 = vmatpush.bf16.msrb.mxu0 %v1780_v59 }
  0xe8   :  { %v2543_v34 = vpop.f32.mrf.mxu0 }
  0xea   :  { %1146 = vmatpush.bf16.msrb.mxu0 %v1768_v10 }
  0xeb   :  { %v2545_v35 = vpop.f32.mrf.mxu1 }
  0xee   :  { %1147 = vmatpush.bf16.msrb.mxu0 %v1756_v24  ;;  %v2009_v24 = vld [vmem:[#allocation16 + $0x54] sm:$0xf] }
  0xf0   :  { %v660_v37 = vpop.f32.mrf.mxu0 }
  0xf1   :  { %v723_v37 = vperm.slane %v2553_v5, 0 }
  0xf3   :  { %v673_v38 = vpop.f32.mrf.mxu1 }
  0xf4   :  { %v1783_v38 = vld [vmem:[#allocation10 + $0x120] sm:$0xf] }
  0xf5   :  { %v1784_v41 = vor.u32 %v1988_v39, %v1783_v38 }
  0xf7   :  { %1118 = vmatpush.bf16.msra.mxu2 %v1784_v41 }
  0xfb   :  { %1119 = vmatpush.bf16.msra.mxu2 %v1772_v53  ;;  %v518_v53 = vadd.f32 %v2541_v32, %v344_v47  ;;  %v1857_v47 = vld [vmem:[#allocation16 + $0x30] sm:$0xf] }
  0xff   :  { %1120 = vmatpush.bf16.msra.mxu2 %v1760_v6 }
 0x103   :  { %1121 = vmatpush.bf16.msra.mxu2 %v1748_v20  ;;  %v1873_v20 = vld [vmem:[#allocation16 + $0x50] sm:$0xf] }
 0x107   :  { %1122 = vmatpush.bf16.msra.mxu2 %v1736_v33 }
 0x14a   :  { %v879_v23 = vpop.f32.mrf.mxu0 }
 0x14b   :  { %v880_v29 = vadd.f32 %v879_v23, %v724_v14  ;;  %v2558_v31 = vpop.f32.mrf.mxu1  ;;  %v1749_v14 = vld [vmem:[#allocation10 + $0xe4] sm:$0xf0] }
 0x14c   :  { %v1752_v23 = vor.u32 %v1978_v13, %v1749_v14  ;;  %v1894_v13 = vor.u32 %v2013_v9, %v1891_v11  ;;  %v1881_v14 = vld [vmem:[#allocation16 + $0x60] sm:$0xf]  ;;  %v1999_v9 = vld [vmem:[#allocation16 + $0x4] sm:$0xf] }
 0x14d   :  { %v916_v36 = vadd.f32 %v880_v29, %v505_v17  ;;  %v1743_v29 = vld [vmem:[#allocation10 + $0xc8] sm:$0xf]  ;;  %v1882_v16 = vor.u32 %v2012_v15, %v1881_v14 }
 0x14e   :  { %1134 = vmatpush.bf16.msra.mxu3 %v1752_v23  ;;  %v1744_v38 = vor.u32 %v1977_v30, %v1743_v29  ;;  %1319 = vmatpush.bf16.msrb.mxu2 %v1894_v13  ;;  %v2010_v23 = vld [vmem:[#allocation16 + $0x54] sm:$0xf0]  ;;  %v1878_v29 = vor.u32 %v2009_v24, %v1875_v26 }
 0x14f   :  { %v1732_v46 = vmul.f32 -1.442695, %v916_v36  ;;  %v1740_v36 = vor.u32 %v1975_v27, %v1737_v28  ;;  %v1874_v25 = vor.u32 %v2010_v23, %v1873_v20  ;;  %v2574_v27 = vld [vmem:[#allocation13 + $0x3] sm:$0x7] }
 0x150   :  { %v866_v48 = vpop.f32.mrf.mxu3  ;;  %1148 = vmatpush.bf16.msrb.mxu0 %v1744_v38  ;;  %v1865_v38 = vld [vmem:[#allocation16 + $0x40] sm:$0xf] }
 0x151   :  { %2037 = vpow2.f32 %v1732_v46  ;;  %v867_v52 = vadd.f32 %v866_v48, %v723_v37 }
 0x152   :  { %v881_v57 = vpop.f32.mrf.mxu0  ;;  %1135 = vmatpush.bf16.msra.mxu3 %v1740_v36  ;;  %v982_v36 = vperm.slane %v2574_v27, 1 }
 0x153   :  { %v896_v62 = vadd.f32 %v867_v52, %v492_v45  ;;  %v894_v63 = vpop.f32.mrf.mxu1  ;;  %v893_v57 = vadd.f32 %v2558_v31, %v725_v50  ;;  %v2567_v31 = vpop.f32.mrf.mxu2 }
 0x155   :  { %v1731_v8 = vmul.f32 -1.442695, %v896_v62 }
 0x157   :  { %v2038_v17 = vpop.eup %2037  ;;  %2039 = vpow2.f32 %v1731_v8  ;;  %v2014_v8 = vld [vmem:[#allocation16 + $0x74] sm:$0xf0] }
 0x158   :  { %v920_v18 = vadd.f32 1.0, %v2038_v17  ;;  %v868_v19 = vpop.f32.mrf.mxu3  ;;  %v1890_v10 = vor.u32 %v2014_v8, %v1889_v7  ;;  %v1883_v17 = vld [vmem:[#allocation16 + $0x68] sm:$0xf0]  ;;  %v1833_v7 = vld [vmem:[#allocation16] sm:$0xf] }
 0x159   :  { %v2572_v19 = vld [vmem:[%s2614_s7 + $0x3] sm:$0x7]  ;;  %v2000_v8 = vld [vmem:[#allocation16 + $0x4] sm:$0xf0] }
 0x15a   :  { %2041 = vrcp.f32 %v920_v18  ;;  %v932_v0 = vand.u32 2147483648, %v920_v18  ;;  %vm926_vm5 = vweird.f32 %v920_v18  ;;  %v930_v59 = vand.u32 2147483647, %v920_v18  ;;  %1306 = vmatpush.bf16.msrb.mxu1 %v1890_v10  ;;  %v1835_v10 = vld [vmem:[#allocation16 + $0x8] sm:$0xf0] }
 0x15b   :  { %v686_v6 = vpop.f32.mrf.mxu2  ;;  %v345_v30 = vperm.slane %v2572_v19, 0  ;;  %v346_v33 = vperm.slane %v2572_v19, 1  ;;  %v1834_v11 = vor.u32 %v2000_v8, %v1833_v7  ;;  %v1838_v14 = vor.u32 %v1999_v9, %v1835_v10 }
 0x15c   :  { %v933_v60 = vor.u32 1.1754944e-38, %v932_v0  ;;  %vm931_vm7 = vcmp.eq.f32.partialorder %v930_v59, 8.507059e+37  ;;  %v1851_v0 = vld [vmem:[#allocation16 + $0x28] sm:$0xf0] }
 0x15d   :  { %v2040_v37 = vpop.eup %2039 }
 0x15e   :  { %v900_v39 = vadd.f32 1.0, %v2040_v37  ;;  %1307 = vmatpush.bf16.msrb.mxu1 %v1882_v16  ;;  %v981_v37 = vperm.slane %v2574_v27, 0 }
 0x160   :  { %2043 = vrcp.f32 %v900_v39  ;;  %v2042_v40 = vpop.eup %2041  ;;  %v912_v46 = vand.u32 2147483648, %v900_v39  ;;  %v910_v48 = vand.u32 2147483647, %v900_v39  ;;  %vm906_vm1 = vweird.f32 %v900_v39 }
 0x161   :  { %v922_v41 = vmul.f32 %v2042_v40, %v920_v18  ;;  %vm927_vm4 = vweird.f32 %v2042_v40 }
 0x162   :  { %v913_v52 = vor.u32 1.1754944e-38, %v912_v46  ;;  %vm911_vm3 = vcmp.eq.f32.partialorder %v910_v48, 8.507059e+37  ;;  %vm928_vm6 = vmor %vm926_vm5, %vm927_vm4  ;;  %1308 = vmatpush.bf16.msrb.mxu1 %v1874_v25  ;;  %v2005_v48 = vld [vmem:[#allocation16 + $0x34] sm:$0xf] }
 0x163   :  { %v923_v44 = vsub.f32 1.0, %v922_v41 }
 0x165   :  { %v924_v49 = vmul.f32 %v2042_v40, %v923_v44  ;;  %v659_v44 = vadd.f32 %v2543_v34, %v345_v30 }
 0x166   :  { %v2044_v42 = vpop.eup %2043 }
 0x167   :  { %v902_v43 = vmul.f32 %v2044_v42, %v900_v39  ;;  %vm907_vm0 = vweird.f32 %v2044_v42  ;;  %v925_v56 = vadd.f32 %v2042_v40, %v924_v49  ;;  %v2008_v39 = vld [vmem:[#allocation16 + $0x44] sm:$0xf0]  ;;  %v672_v49 = vadd.f32 %v2545_v35, %v346_v33 }
 0x168   :  { %vm908_vm2 = vmor %vm906_vm1, %vm907_vm0  ;;  %v1866_v41 = vor.u32 %v2008_v39, %v1865_v38 }
 0x169   :  { %v903_v45 = vsub.f32 1.0, %v902_v43  ;;  %v929_v5 = vsel %vm928_vm6, %v2042_v40, %v925_v56  ;;  %v2007_v40 = vld [vmem:[#allocation16 + $0x44] sm:$0xf] }
 0x16a   :  { %v934_v61 = vsel %vm931_vm7, %v933_v60, %v929_v5  ;;  %1309 = vmatpush.bf16.msrb.mxu1 %v1866_v41  ;;  %v1841_v5 = vld [vmem:[#allocation16 + $0x10] sm:$0xf] }
 0x16b   :  { %v904_v12 = vmul.f32 %v2044_v42, %v903_v45  ;;  %v939_v62 = vsub.f32 1.0, %v934_v61  ;;  %v941_v1 = vmul.f32 %v934_v61, %v2522_v3  ;;  %v2011_v3 = vld [vmem:[#allocation16 + $0x64] sm:$0xf] }
 0x16c   :  { %v1886_v18 = vor.u32 %v2011_v3, %v1883_v17 }
 0x16d   :  { %v905_v51 = vadd.f32 %v2044_v42, %v904_v12  ;;  %v2006_v12 = vld [vmem:[#allocation16 + $0x34] sm:$0xf0] }
 0x16e   :  { %1320 = vmatpush.bf16.msrb.mxu2 %v1886_v18 }
 0x16f   :  { %v909_v54 = vsel %vm908_vm2, %v2044_v42, %v905_v51  ;;  %v1867_v42 = vld [vmem:[#allocation16 + $0x48] sm:$0xf0] }
 0x170   :  { %v914_v55 = vsel %vm911_vm3, %v913_v52, %v909_v54  ;;  %v1870_v43 = vor.u32 %v2007_v40, %v1867_v42  ;;  %v1858_v52 = vor.u32 %v2006_v12, %v1857_v47  ;;  %v1849_v54 = vld [vmem:[#allocation16 + $0x20] sm:$0xf] }
 0x171   :  { %v936_v58 = vmul.f32 %v914_v55, %v518_v53  ;;  %v1859_v53 = vld [vmem:[#allocation16 + $0x38] sm:$0xf0]  ;;  %v2004_v55 = vld [vmem:[#allocation16 + $0x24] sm:$0xf0] }
 0x172   :  { %1321 = vmatpush.bf16.msrb.mxu2 %v1878_v29  ;;  %v1862_v56 = vor.u32 %v2005_v48, %v1859_v53  ;;  %1310 = vmatpush.bf16.msrb.mxu1 %v1858_v52  ;;  %v347_v29 = vperm.slane %v2572_v19, 2 }
 0x173   :  { %v937_v21 = vadd.f32 %v936_v58, %v893_v57  ;;  %v2003_v57 = vld [vmem:[#allocation16 + $0x24] sm:$0xf] }
 0x174   :  { %v1854_v35 = vor.u32 %v2003_v57, %v1851_v0  ;;  %v685_v40 = vadd.f32 %v2567_v31, %v347_v29 }
 0x175   :  { %2045 = vtanh.f32 %v937_v21  ;;  %v1850_v21 = vor.u32 %v2004_v55, %v1849_v54 }
 0x176   :  { %1322 = vmatpush.bf16.msrb.mxu2 %v1870_v43 }
 0x177   :  { %1311 = vmatpush.bf16.msrb.mxu1 %v1850_v21 }
 0x17a   :  { %1323 = vmatpush.bf16.msrb.mxu2 %v1862_v56 }
 0x17b   :  { %v2046_v32 = vpop.eup %2045 }
 0x17c   :  { %v940_v63 = vmul.f32 %v2046_v32, %v939_v62  ;;  %v2002_v62 = vld [vmem:[#allocation16 + $0x14] sm:$0xf0]  ;;  %v2001_v32 = vld [vmem:[#allocation16 + $0x14] sm:$0xf] }
 0x17e   :  { %v942_v2 = vadd.f32 %v941_v1, %v940_v63  ;;  %v1843_v63 = vld [vmem:[#allocation16 + $0x18] sm:$0xf0]  ;;  %1324 = vmatpush.bf16.msrb.mxu2 %v1854_v35 }
 0x17f   :  { %v1846_v6 = vor.u32 %v2001_v32, %v1843_v63 }
 0x180   :  { %v944_v4 = vpack.c.bf16 %v942_v2, %v942_v2  ;;  %943 = vst [vmem:[#allocation21] sm:$0xff] %v942_v2 }
 0x182   :  { %1123 = vmatmul.bf16.vlgmr.msra.gmra.mxu2 %v944_v4  ;;  %1136 = vmatmul.bf16.vlgmr.msra.gmra.mxu3 %v944_v4 }
 0x183   :  { %1149 = vmatmul.bf16.vlgmr.msrb.gmra.mxu0 %v944_v4  ;;  %v1842_v4 = vor.u32 %v2002_v62, %v1841_v5  ;;  %1325 = vmatpush.bf16.msrb.mxu2 %v1846_v6  ;;  %v1332_v5 = vld [vmem:[#allocation5] sm:$0xff] }
 0x185   :  { %1312 = vmatpush.bf16.msrb.mxu1 %v1842_v4 }
 0x187   :  { %1326 = vmatpush.bf16.msrb.mxu2 %v1838_v14 }
 0x189   :  { %1313 = vmatpush.bf16.msrb.mxu1 %v1834_v11 }
 0x200   :  { %v2576_v28 = vpop.f32.mrf.mxu0 }
 0x205   :  { %v1124_v45 = vpop.f32.mrf.mxu2  ;;  %v1137_v46 = vpop.f32.mrf.mxu3 }
 0x206   :  { %v1125_v50 = vadd.f32 %v1124_v45, %v981_v37  ;;  %v1138_v51 = vadd.f32 %v1137_v46, %v982_v36  ;;  %v983_v36 = vperm.slane %v2574_v27, 2 }
 0x208   :  { %v1154_v58 = vadd.f32 %v1125_v50, %v659_v44  ;;  %v1174_v34 = vadd.f32 %v1138_v51, %v672_v49  ;;  %v1152_v59 = vpop.f32.mrf.mxu0  ;;  %v1151_v44 = vadd.f32 %v2576_v28, %v983_v36 }
 0x20a   :  { %v1829_v60 = vmul.f32 -1.442695, %v1154_v58  ;;  %v1830_v61 = vmul.f32 -1.442695, %v1174_v34 }
 0x20c   :  { %2047 = vpow2.f32 %v1829_v60 }
 0x20d   :  { %2049 = vpow2.f32 %v1830_v61  ;;  %v1126_v1 = vpop.f32.mrf.mxu2  ;;  %v1139_v2 = vpop.f32.mrf.mxu3 }
 0x212   :  { %v2048_v13 = vpop.eup %2047 }
 0x213   :  { %v2050_v15 = vpop.eup %2049  ;;  %v1158_v3 = vadd.f32 1.0, %v2048_v13 }
 0x214   :  { %v1178_v16 = vadd.f32 1.0, %v2050_v15 }
 0x215   :  { %2051 = vrcp.f32 %v1158_v3  ;;  %v1170_v25 = vand.u32 2147483648, %v1158_v3  ;;  %v1168_v33 = vand.u32 2147483647, %v1158_v3  ;;  %vm1164_vm9 = vweird.f32 %v1158_v3 }
 0x216   :  { %2053 = vrcp.f32 %v1178_v16  ;;  %v1190_v19 = vand.u32 2147483648, %v1178_v16  ;;  %vm1184_vm13 = vweird.f32 %v1178_v16  ;;  %v1188_v46 = vand.u32 2147483647, %v1178_v16 }
 0x217   :  { %v1171_v39 = vor.u32 1.1754944e-38, %v1170_v25  ;;  %vm1169_vm11 = vcmp.eq.f32.partialorder %v1168_v33, 8.507059e+37 }
 0x218   :  { %v1191_v12 = vor.u32 1.1754944e-38, %v1190_v19  ;;  %vm1189_vm15 = vcmp.eq.f32.partialorder %v1188_v46, 8.507059e+37 }
 0x21b   :  { %v2052_v17 = vpop.eup %2051 }
 0x21c   :  { %v2054_v18 = vpop.eup %2053  ;;  %v1160_v20 = vmul.f32 %v2052_v17, %v1158_v3  ;;  %vm1165_vm8 = vweird.f32 %v2052_v17 }
 0x21d   :  { %v1180_v23 = vmul.f32 %v2054_v18, %v1178_v16  ;;  %vm1166_vm10 = vmor %vm1164_vm9, %vm1165_vm8  ;;  %vm1185_vm12 = vweird.f32 %v2054_v18 }
 0x21e   :  { %v1161_v24 = vsub.f32 1.0, %v1160_v20  ;;  %vm1186_vm14 = vmor %vm1184_vm13, %vm1185_vm12 }
 0x21f   :  { %v1181_v26 = vsub.f32 1.0, %v1180_v23 }
 0x220   :  { %v1162_v30 = vmul.f32 %v2052_v17, %v1161_v24 }
 0x221   :  { %v1182_v37 = vmul.f32 %v2054_v18, %v1181_v26 }
 0x222   :  { %v1163_v38 = vadd.f32 %v2052_v17, %v1162_v30 }
 0x223   :  { %v1183_v43 = vadd.f32 %v2054_v18, %v1182_v37 }
 0x224   :  { %v1167_v41 = vsel %vm1166_vm10, %v2052_v17, %v1163_v38 }
 0x225   :  { %v1172_v42 = vsel %vm1169_vm11, %v1171_v39, %v1167_v41  ;;  %v1187_v27 = vsel %vm1186_vm14, %v2054_v18, %v1183_v43 }
 0x226   :  { %v1194_v45 = vmul.f32 %v1172_v42, %v685_v40  ;;  %v1192_v48 = vsel %vm1189_vm15, %v1191_v12, %v1187_v27 }
 0x227   :  { %v1197_v49 = vsub.f32 1.0, %v1192_v48  ;;  %v1199_v51 = vmul.f32 %v1192_v48, %v2530_v22  ;;  %v1220_v22 = vld [vmem:[%s2617_s10] sm:$0x3]  ;;  %s2407_s10 = smov [#allocation17]  }
 0x228   :  { %v1195_v47 = vadd.f32 %v1194_v45, %v1151_v44  ;;  %v1222_v28 = vperm.slane %v1220_v22, 0  ;;  %v1223_v56 = vperm.slane %v1220_v22, 1  ;;  %s1346_s12 = sshll.u32 %s2407_s10, 4  ;;  %s1347_s12 = int_to_ptr.vmem [resolvable:$true] %s1346_s12 }
 0x22a   :  { %2055 = vtanh.f32 %v1195_v47 }
 0x230   :  { %v2056_v31 = vpop.eup %2055 }
 0x231   :  { %v1198_v50 = vmul.f32 %v2056_v31, %v1197_v49 }
 0x233   :  { %v1200_v52 = vadd.f32 %v1199_v51, %v1198_v50 }
 0x235   :  { %v1203_v53 = vpack.c.bf16 %v1200_v52, %v1200_v52  ;;  %1202 = vst [vmem:[#allocation21 + $0x8] sm:$0xff] %v1200_v52 }
 0x236   :  { %1386 = dma.vmem_to_hbm [thread:$0]  %s1379_s29, 256, %s1381_s27, [#allocation22], %s2393_s17, %s2393_s17, %s2394_s5  }
 0x237   :  { %1314 = vmatmul.bf16.vlgmr.msrb.gmra.mxu1 %v1203_v53  ;;  %1327 = vmatmul.bf16.vlgmr.msrb.gmra.mxu2 %v1203_v53 }
 0x2b4   :  { %v1315_v54 = vpop.f32.mrf.mxu1 }
 0x2b5   :  { %v1316_v55 = vadd.f32 %v1315_v54, %v1222_v28 }
 0x2b7   :  { %1339 = vst [vmem:[#allocation18] sm:$0xff] %v1316_v55 }
 0x2b8   :  { %1362 = dma.vmem_to_hbm [thread:$0]  %s1358_s18, 128, %s1360_s8, [#allocation19]  }
 0x2ba   :  { %v1328_v57 = vpop.f32.mrf.mxu2 }
 0x2bb   :  { %v1329_v0 = vadd.f32 %v1328_v57, %v1223_v56 }
 0x2bc   :  { %v1317_v58 = vpop.f32.mrf.mxu1 }
 0x2bd   :  { %v1333_v34 = vmul.f32 0.5, %v1329_v0  ;;  %1340 = vst [vmem:[#allocation20] sm:$0xff] %v1329_v0 }
 0x2be   :  { %1373 = dma.vmem_to_hbm [thread:$0]  %s1369_s20, 128, %s1371_s21, [#allocation19]  }
 0x2bf   :  { %v1334_v59 = vmul.f32 1.442695, %v1333_v34 }
 0x2c1   :  { %2057 = vpow2.f32 %v1334_v59 }
 0x2c2   :  { %v1330_v21 = vpop.f32.mrf.mxu2 }
 0x2c7   :  { %v2058_v60 = vpop.eup %2057 }
 0x2c8   :  { %v1336_v61 = vmul.f32 %v2058_v60, %v1332_v5 }
 0x2ca   :  { %v1337_v35 = vadd.f32 %v1336_v61, %v1316_v55 }
 0x2cc   :  { %1338 = vst [vmem:[#allocation17] sm:$0xff] %v1337_v35 }
 0x2cd   :  { %1351 = dma.vmem_to_hbm [thread:$0]  %s1347_s12, 128, %s1349_s13, [#allocation4]  }
 0x2ce   :  { %2381 = dma.done.wait [#allocation4], 128  }
 0x2cf   :  { %2382 = vsyncadd [#allocation4], 4294967168 }
 0x2d0   :  { %2383 = dma.done.wait [#allocation19], 256  }
 0x2d1   :  { %2384 = vsyncadd [#allocation19], 4294967040 }
 0x2d2   :  { %2385 = dma.done.wait [#allocation22], 256  }
 0x2d3   :  { %2386 = vsyncadd [#allocation22], 4294967040 }
 0x2d4   :  { %1403 = vsyncpa [#allocation3], 1 }
 0x2d5   :  { %1404 = vsyncpa [#allocation6], 1 }
 0x2d6   :  { %1405 = vsyncpa [#allocation9], 1 }
 0x2d7   :  { %1406 = vsyncpa [#allocation12], 1 }
 0x2d8   :  { %1407 = vsyncpa [#allocation15], 1 }
 0x2d9   :  { %1408 = vsyncpa [#allocation4], 1 }
 0x2da   :  { %1409 = vsyncpa [#allocation19], 1 }
 0x2db   :  { %1410 = vsyncpa [#allocation22], 1 }

</bundles_post_ra>
